<compile_context>
chip_gen: v7x
topology: tpu7x:2x2x1
jax: 0.10.0
libtpu: 0.0.40
codegen_flags: <defaults>
</compile_context>

<pallas_src>
import jax
import jax.numpy as jnp
from jax.experimental import pallas as pl
from jax.experimental.pallas import tpu as pltpu

H1 = 400          # hidden_size[0]
H2 = 300          # hidden_size[1]
H1P = 512         # 128-aligned padded branch width for the fused layer 1


def _round_up(x, m):
    return (x + m - 1) // m * m


def _critic_kernel(s_ref, a_ref,
                   w14s_ref, w14a_ref, b14_ref,
                   w2_ref, b2_ref, w5_ref, b5_ref,
                   w3t_ref, w6t_ref, b36_ref,
                   q_ref):
    # ---- fused layer 1 (both Q branches in one MXU pass), bf16 * bf16 -> f32 ----
    hg = jnp.dot(s_ref[...], w14s_ref[...], preferred_element_type=jnp.float32)
    hg = hg + jnp.dot(a_ref[...], w14a_ref[...],
                      preferred_element_type=jnp.float32)
    hg = jnp.maximum(hg + b14_ref[...], 0.0)          # [tb, 2*H1P] f32
    hg = hg.astype(jnp.bfloat16)

    # 128-lane-aligned split into the two branches (free sub-range views).
    h = hg[:, :H1P]          # Q1 branch; cols H1:H1P are exactly zero
    g = hg[:, H1P:]          # Q2 branch

    # ---- layer 2 (K padded to 512 with zero rows -> no effect on result) ----
    h2 = jnp.maximum(
        jnp.dot(h, w2_ref[...], preferred_element_type=jnp.float32) + b2_ref[...],
        0.0)                                            # [tb, H2] f32
    g2 = jnp.maximum(
        jnp.dot(g, w5_ref[...], preferred_element_type=jnp.float32) + b5_ref[...],
        0.0)                                            # [tb, H2] f32

    # ---- heads: N=1 matmul replaced by VPU multiply + lane reduction ----
    q1 = jnp.sum(h2 * w3t_ref[...], axis=-1, keepdims=True) + b36_ref[:, 0:1]
    q2 = jnp.sum(g2 * w6t_ref[...], axis=-1, keepdims=True) + b36_ref[:, 1:2]

    # pack both heads into one (tb, 2) output tile
    q_ref[:, 0:1] = q1.astype(q_ref.dtype)
    q_ref[:, 1:2] = q2.astype(q_ref.dtype)


def _pack_params(params, state_dim, action_dim):
    """Pack/pad/cast PyTorch-layout params into the kernel layout."""
    (w1, b1, w2, b2, w3, b3, w4, b4, w5, b5, w6, b6) = params
    D = state_dim + action_dim
    bf = jnp.bfloat16

    # fused + padded layer-1 weight/bias: cols [0:H1]=branch1, [H1P:H1P+H1]=branch2
    w14 = jnp.zeros((D, 2 * H1P), jnp.float32)
    w14 = w14.at[:, :H1].set(w1).at[:, H1P:H1P + H1].set(w4)
    b14 = jnp.zeros((1, 2 * H1P), jnp.float32)
    b14 = b14.at[:, :H1].set(b1).at[:, H1P:H1P + H1].set(b4)

    # layer-2 weights padded with zero rows to K=H1P
    w2p = jnp.zeros((H1P, H2), jnp.float32).at[:H1].set(w2)
    w5p = jnp.zeros((H1P, H2), jnp.float32).at[:H1].set(w5)

    # head weights as lane-dense rows [1, H2]; biases packed as [1, 2]
    w3t = w3.T
    w6t = w6.T
    b36 = jnp.concatenate([b3, b6], axis=1)

    return (w14[:state_dim].astype(bf),      # [Ds, 2*H1P]
            w14[state_dim:].astype(bf),      # [Da, 2*H1P]
            b14,                             # [1, 2*H1P] f32
            w2p.astype(bf), b2,              # [H1P, H2] bf16, [1, H2] f32
            w5p.astype(bf), b5,
            w3t, w6t, b36)                   # f32 (VPU head)


def critic_forward(state, action, params, *, block_b=256):
    """Pallas implementation of Critic.forward -> (q1, q2)."""
    B, Ds = state.shape
    Da = action.shape[1]
    D = Ds + Da

    packed = _pack_params(params, Ds, Da)
    (w14s, w14a, b14, w2p, b2, w5p, b5, w3t, w6t, b36) = packed

    # Batch tiling: big MXU-filling tiles; multiple tiles (parallel grid axis)
    # let the megacore shard work across its TensorCores.
    tb = min(block_b, _round_up(B, 8))
    Bp = _round_up(B, tb)
    if Bp != B:
        state = jnp.pad(state, ((0, Bp - B), (0, 0)))
        action = jnp.pad(action, ((0, Bp - B), (0, 0)))
    grid = (Bp // tb,)

    state_bf = state.astype(jnp.bfloat16)
    action_bf = action.astype(jnp.bfloat16)

    def x_map(i):
        return (i, 0)

    def const_map(i):
        return (0, 0)   # same block every step -> pipeline skips weight re-DMA

    in_specs = [
        pl.BlockSpec((tb, Ds), x_map),
        pl.BlockSpec((tb, Da), x_map),
        pl.BlockSpec((Ds, 2 * H1P), const_map),
        pl.BlockSpec((Da, 2 * H1P), const_map),
        pl.BlockSpec((1, 2 * H1P), const_map),
        pl.BlockSpec((H1P, H2), const_map),
        pl.BlockSpec((1, H2), const_map),
        pl.BlockSpec((H1P, H2), const_map),
        pl.BlockSpec((1, H2), const_map),
        pl.BlockSpec((1, H2), const_map),
        pl.BlockSpec((1, H2), const_map),
        pl.BlockSpec((1, 2), const_map),
    ]
    out_specs = pl.BlockSpec((tb, 2), x_map)
    out_shape = jax.ShapeDtypeStruct((Bp, 2), jnp.float32)

    args = (state_bf, action_bf, w14s, w14a, b14, w2p, b2, w5p, b5, w3t, w6t, b36)
    flops = 2 * Bp * 2 * (D * H1 + H1 * H2 + H2)
    bytes_accessed = sum(int(a.size) * a.dtype.itemsize for a in args) + Bp * 2 * 4

    q = pl.pallas_call(
        _critic_kernel,
        grid_spec=pltpu.PrefetchScalarGridSpec(
            num_scalar_prefetch=0,
            grid=grid,
            in_specs=in_specs,
            out_specs=out_specs,
        ),
        out_shape=out_shape,
        compiler_params=pltpu.CompilerParams(
            dimension_semantics=("parallel",)),
        cost_estimate=pl.CostEstimate(
            flops=flops, transcendentals=0, bytes_accessed=bytes_accessed),
    )(*args)

    q = q[:B]
    return q[:, 0:1], q[:, 1:2]


def init_critic_params(key, state_dim, action_dim):
    """Deterministic PyTorch-style init; weights stored as [in, out]."""
    D = state_dim + action_dim
    dims = [(D, H1), (H1, H2), (H2, 1), (D, H1), (H1, H2), (H2, 1)]
    params = []
    keys = jax.random.split(key, 2 * len(dims))
    for idx, (fan_in, fan_out) in enumerate(dims):
        bound = 1.0 / jnp.sqrt(jnp.float32(fan_in))
        w = jax.random.uniform(keys[2 * idx], (fan_in, fan_out),
                               minval=-bound, maxval=bound, dtype=jnp.float32)
        b = jax.random.uniform(keys[2 * idx + 1], (1, fan_out),
                               minval=-bound, maxval=bound, dtype=jnp.float32)
        params += [w, b]
    return tuple(params)


def critic_forward_ref(state, action, params):
    """Pure-JAX fp32 reference (nn.Linear semantics) for verification."""
    x = jnp.concatenate([state, action], axis=1)
    (w1, b1, w2, b2, w3, b3, w4, b4, w5, b5, w6, b6) = params
    h = jax.nn.relu(x @ w1 + b1)
    h = jax.nn.relu(h @ w2 + b2)
    q1 = h @ w3 + b3
    g = jax.nn.relu(x @ w4 + b4)
    g = jax.nn.relu(g @ w5 + b5)
    q2 = g @ w6 + b6
    return q1, q2


if __name__ == "__main__":
    key = jax.random.PRNGKey(0)
    k_param, k_state, k_action = jax.random.split(key, 3)

    batch, state_dim, action_dim = 64, 8, 4
    params = init_critic_params(k_param, state_dim, action_dim)
    state = jax.random.normal(k_state, (batch, state_dim), dtype=jnp.float32)
    action = jax.random.normal(k_action, (batch, action_dim), dtype=jnp.float32)

    q1, q2 = critic_forward(state, action, params)
    q1 = jax.block_until_ready(q1)
    q2 = jax.block_until_ready(q2)

    q1_ref, q2_ref = critic_forward_ref(state, action, params)
    assert q1.shape == (batch, 1) and q2.shape == (batch, 1)
    # bf16 MXU math with f32 accumulation -> compare loosely against fp32 ref.
    assert jnp.allclose(q1, q1_ref, atol=7.5e-2, rtol=7.5e-2), "q1 mismatch"
    assert jnp.allclose(q2, q2_ref, atol=7.5e-2, rtol=7.5e-2), "q2 mismatch"

    print("KERNEL_OK")
</pallas_src>

<mosaic_0001>
module attributes {stable_mosaic.version = 11 : i64} {
  func.func @_critic_kernel(%arg0: i32, %arg1: memref<64x8xbf16, #tpu.memory_space<vmem>>, %arg2: memref<64x4xbf16, #tpu.memory_space<vmem>>, %arg3: memref<8x1024xbf16, #tpu.memory_space<vmem>>, %arg4: memref<4x1024xbf16, #tpu.memory_space<vmem>>, %arg5: memref<1x1024xf32, #tpu.memory_space<vmem>>, %arg6: memref<512x300xbf16, #tpu.memory_space<vmem>>, %arg7: memref<1x300xf32, #tpu.memory_space<vmem>>, %arg8: memref<512x300xbf16, #tpu.memory_space<vmem>>, %arg9: memref<1x300xf32, #tpu.memory_space<vmem>>, %arg10: memref<1x300xf32, #tpu.memory_space<vmem>>, %arg11: memref<1x300xf32, #tpu.memory_space<vmem>>, %arg12: memref<1x2xf32, #tpu.memory_space<vmem>>, %arg13: memref<64x2xf32, #tpu.memory_space<vmem>>) attributes {dimension_semantics = [#tpu.dimension_semantics<parallel>], iteration_bounds = array<i64: 1>, scalar_prefetch = 0 : i64, scratch_operands = 0 : i64, tpu.core_type = #tpu.core_type<tc>, window_params = [{transform_indices = @transform_0, window_bounds = array<i64: 64, 8>}, {transform_indices = @transform_1, window_bounds = array<i64: 64, 4>}, {pipeline_mode = #tpu.pipeline_mode<synchronous>, transform_indices = @transform_2, window_bounds = array<i64: 8, 1024>}, {pipeline_mode = #tpu.pipeline_mode<synchronous>, transform_indices = @transform_3, window_bounds = array<i64: 4, 1024>}, {pipeline_mode = #tpu.pipeline_mode<synchronous>, transform_indices = @transform_4, window_bounds = array<i64: 1, 1024>}, {pipeline_mode = #tpu.pipeline_mode<synchronous>, transform_indices = @transform_5, window_bounds = array<i64: 512, 300>}, {pipeline_mode = #tpu.pipeline_mode<synchronous>, transform_indices = @transform_6, window_bounds = array<i64: 1, 300>}, {pipeline_mode = #tpu.pipeline_mode<synchronous>, transform_indices = @transform_7, window_bounds = array<i64: 512, 300>}, {pipeline_mode = #tpu.pipeline_mode<synchronous>, transform_indices = @transform_8, window_bounds = array<i64: 1, 300>}, {pipeline_mode = #tpu.pipeline_mode<synchronous>, transform_indices = @transform_9, window_bounds = array<i64: 1, 300>}, {pipeline_mode = #tpu.pipeline_mode<synchronous>, transform_indices = @transform_10, window_bounds = array<i64: 1, 300>}, {pipeline_mode = #tpu.pipeline_mode<synchronous>, transform_indices = @transform_11, window_bounds = array<i64: 1, 2>}, {transform_indices = @transform_12, window_bounds = array<i64: 64, 2>}]} {
    %c0 = arith.constant 0 : index
    %c0_0 = arith.constant 0 : index
    %0 = vector.load %arg1[%c0, %c0_0] : memref<64x8xbf16, #tpu.memory_space<vmem>>, vector<64x8xbf16>
    %c0_1 = arith.constant 0 : index
    %c0_2 = arith.constant 0 : index
    %1 = vector.load %arg3[%c0_1, %c0_2] : memref<8x1024xbf16, #tpu.memory_space<vmem>>, vector<8x1024xbf16>
    %cst = arith.constant dense<0.000000e+00> : vector<64x1024xf32>
    %2 = tpu.matmul %0, %1, %cst {dimension_numbers = #tpu.dot_dimension_numbers<[1], [0], [0], [1], [0, 0, 1, 1], [], []>} : vector<64x8xbf16>, vector<8x1024xbf16>, vector<64x1024xf32> -> vector<64x1024xf32>
    %c0_3 = arith.constant 0 : index
    %c0_4 = arith.constant 0 : index
    %3 = vector.load %arg2[%c0_3, %c0_4] : memref<64x4xbf16, #tpu.memory_space<vmem>>, vector<64x4xbf16>
    %c0_5 = arith.constant 0 : index
    %c0_6 = arith.constant 0 : index
    %4 = vector.load %arg4[%c0_5, %c0_6] : memref<4x1024xbf16, #tpu.memory_space<vmem>>, vector<4x1024xbf16>
    %cst_7 = arith.constant dense<0.000000e+00> : vector<64x1024xf32>
    %5 = tpu.matmul %3, %4, %cst_7 {dimension_numbers = #tpu.dot_dimension_numbers<[1], [0], [0], [1], [0, 0, 1, 1], [], []>} : vector<64x4xbf16>, vector<4x1024xbf16>, vector<64x1024xf32> -> vector<64x1024xf32>
    %6 = arith.addf %2, %5 : vector<64x1024xf32>
    %c0_8 = arith.constant 0 : index
    %c0_9 = arith.constant 0 : index
    %7 = vector.load %arg5[%c0_8, %c0_9] : memref<1x1024xf32, #tpu.memory_space<vmem>>, vector<1x1024xf32>
    %8 = vector.broadcast %7 : vector<1x1024xf32> to vector<64x1024xf32>
    %9 = arith.addf %6, %8 : vector<64x1024xf32>
    %cst_10 = arith.constant 0.000000e+00 : f32
    %10 = vector.broadcast %cst_10 : f32 to vector<64x1024xf32>
    %11 = arith.maximumf %9, %10 : vector<64x1024xf32>
    %12 = arith.truncf %11 : vector<64x1024xf32> to vector<64x1024xbf16>
    %13 = vector.extract_strided_slice %12 {offsets = [0, 0], sizes = [64, 512], strides = [1, 1]} : vector<64x1024xbf16> to vector<64x512xbf16>
    %14 = vector.extract_strided_slice %12 {offsets = [0, 512], sizes = [64, 512], strides = [1, 1]} : vector<64x1024xbf16> to vector<64x512xbf16>
    %c0_11 = arith.constant 0 : index
    %c0_12 = arith.constant 0 : index
    %15 = vector.load %arg6[%c0_11, %c0_12] : memref<512x300xbf16, #tpu.memory_space<vmem>>, vector<512x300xbf16>
    %cst_13 = arith.constant dense<0.000000e+00> : vector<64x300xf32>
    %16 = tpu.matmul %13, %15, %cst_13 {dimension_numbers = #tpu.dot_dimension_numbers<[1], [0], [0], [1], [0, 0, 1, 1], [], []>} : vector<64x512xbf16>, vector<512x300xbf16>, vector<64x300xf32> -> vector<64x300xf32>
    %c0_14 = arith.constant 0 : index
    %c0_15 = arith.constant 0 : index
    %17 = vector.load %arg7[%c0_14, %c0_15] : memref<1x300xf32, #tpu.memory_space<vmem>>, vector<1x300xf32>
    %18 = vector.broadcast %17 : vector<1x300xf32> to vector<64x300xf32>
    %19 = arith.addf %16, %18 : vector<64x300xf32>
    %cst_16 = arith.constant 0.000000e+00 : f32
    %20 = vector.broadcast %cst_16 : f32 to vector<64x300xf32>
    %21 = arith.maximumf %19, %20 : vector<64x300xf32>
    %c0_17 = arith.constant 0 : index
    %c0_18 = arith.constant 0 : index
    %22 = vector.load %arg8[%c0_17, %c0_18] : memref<512x300xbf16, #tpu.memory_space<vmem>>, vector<512x300xbf16>
    %cst_19 = arith.constant dense<0.000000e+00> : vector<64x300xf32>
    %23 = tpu.matmul %14, %22, %cst_19 {dimension_numbers = #tpu.dot_dimension_numbers<[1], [0], [0], [1], [0, 0, 1, 1], [], []>} : vector<64x512xbf16>, vector<512x300xbf16>, vector<64x300xf32> -> vector<64x300xf32>
    %c0_20 = arith.constant 0 : index
    %c0_21 = arith.constant 0 : index
    %24 = vector.load %arg9[%c0_20, %c0_21] : memref<1x300xf32, #tpu.memory_space<vmem>>, vector<1x300xf32>
    %25 = vector.broadcast %24 : vector<1x300xf32> to vector<64x300xf32>
    %26 = arith.addf %23, %25 : vector<64x300xf32>
    %cst_22 = arith.constant 0.000000e+00 : f32
    %27 = vector.broadcast %cst_22 : f32 to vector<64x300xf32>
    %28 = arith.maximumf %26, %27 : vector<64x300xf32>
    %c0_23 = arith.constant 0 : index
    %c0_24 = arith.constant 0 : index
    %29 = vector.load %arg10[%c0_23, %c0_24] : memref<1x300xf32, #tpu.memory_space<vmem>>, vector<1x300xf32>
    %30 = vector.broadcast %29 : vector<1x300xf32> to vector<64x300xf32>
    %31 = arith.mulf %21, %30 : vector<64x300xf32>
    %cst_25 = arith.constant dense<0.000000e+00> : vector<64xf32>
    %32 = vector.multi_reduction <add>, %31, %cst_25 [1] : vector<64x300xf32> to vector<64xf32>
    %33 = vector.shape_cast %32 : vector<64xf32> to vector<64x1xf32>
    %c0_26 = arith.constant 0 : index
    %c0_27 = arith.constant 0 : index
    %34 = vector.load %arg12[%c0_26, %c0_27] : memref<1x2xf32, #tpu.memory_space<vmem>>, vector<1x1xf32>
    %35 = vector.broadcast %34 : vector<1x1xf32> to vector<64x1xf32>
    %36 = arith.addf %33, %35 : vector<64x1xf32>
    %c0_28 = arith.constant 0 : index
    %c0_29 = arith.constant 0 : index
    %37 = vector.load %arg11[%c0_28, %c0_29] : memref<1x300xf32, #tpu.memory_space<vmem>>, vector<1x300xf32>
    %38 = vector.broadcast %37 : vector<1x300xf32> to vector<64x300xf32>
    %39 = arith.mulf %28, %38 : vector<64x300xf32>
    %cst_30 = arith.constant dense<0.000000e+00> : vector<64xf32>
    %40 = vector.multi_reduction <add>, %39, %cst_30 [1] : vector<64x300xf32> to vector<64xf32>
    %41 = vector.shape_cast %40 : vector<64xf32> to vector<64x1xf32>
    %c0_31 = arith.constant 0 : index
    %c1 = arith.constant 1 : index
    %42 = vector.load %arg12[%c0_31, %c1] : memref<1x2xf32, #tpu.memory_space<vmem>>, vector<1x1xf32>
    %43 = vector.broadcast %42 : vector<1x1xf32> to vector<64x1xf32>
    %44 = arith.addf %41, %43 : vector<64x1xf32>
    %c0_32 = arith.constant 0 : index
    %c0_33 = arith.constant 0 : index
    %45 = vector.load %arg13[%c0_32, %c0_33] : memref<64x2xf32, #tpu.memory_space<vmem>>, vector<64x1xf32>
    tpu.vector_store %arg13[%c0_32, %c0_33], %36 {strides = array<i32>} : memref<64x2xf32, #tpu.memory_space<vmem>>, vector<64x1xf32>,
    %c0_34 = arith.constant 0 : index
    %c1_35 = arith.constant 1 : index
    %46 = vector.load %arg13[%c0_34, %c1_35] : memref<64x2xf32, #tpu.memory_space<vmem>>, vector<64x1xf32>
    tpu.vector_store %arg13[%c0_34, %c1_35], %44 {strides = array<i32>} : memref<64x2xf32, #tpu.memory_space<vmem>>, vector<64x1xf32>,
    return
  }
  func.func @transform_0(%arg0: i32) -> (i32, i32) {
    %c0_i32 = arith.constant 0 : i32
    %c0_i32_0 = arith.constant 0 : i32
    return %arg0, %c0_i32 : i32, i32
  }
  func.func @transform_1(%arg0: i32) -> (i32, i32) {
    %c0_i32 = arith.constant 0 : i32
    %c0_i32_0 = arith.constant 0 : i32
    return %arg0, %c0_i32 : i32, i32
  }
  func.func @transform_2(%arg0: i32) -> (i32, i32) {
    %c0_i32 = arith.constant 0 : i32
    %c0_i32_0 = arith.constant 0 : i32
    %c0_i32_1 = arith.constant 0 : i32
    return %c0_i32, %c0_i32_0 : i32, i32
  }
  func.func @transform_3(%arg0: i32) -> (i32, i32) {
    %c0_i32 = arith.constant 0 : i32
    %c0_i32_0 = arith.constant 0 : i32
    %c0_i32_1 = arith.constant 0 : i32
    return %c0_i32, %c0_i32_0 : i32, i32
  }
  func.func @transform_4(%arg0: i32) -> (i32, i32) {
    %c0_i32 = arith.constant 0 : i32
    %c0_i32_0 = arith.constant 0 : i32
    %c0_i32_1 = arith.constant 0 : i32
    return %c0_i32, %c0_i32_0 : i32, i32
  }
  func.func @transform_5(%arg0: i32) -> (i32, i32) {
    %c0_i32 = arith.constant 0 : i32
    %c0_i32_0 = arith.constant 0 : i32
    %c0_i32_1 = arith.constant 0 : i32
    return %c0_i32, %c0_i32_0 : i32, i32
  }
  func.func @transform_6(%arg0: i32) -> (i32, i32) {
    %c0_i32 = arith.constant 0 : i32
    %c0_i32_0 = arith.constant 0 : i32
    %c0_i32_1 = arith.constant 0 : i32
    return %c0_i32, %c0_i32_0 : i32, i32
  }
  func.func @transform_7(%arg0: i32) -> (i32, i32) {
    %c0_i32 = arith.constant 0 : i32
    %c0_i32_0 = arith.constant 0 : i32
    %c0_i32_1 = arith.constant 0 : i32
    return %c0_i32, %c0_i32_0 : i32, i32
  }
  func.func @transform_8(%arg0: i32) -> (i32, i32) {
    %c0_i32 = arith.constant 0 : i32
    %c0_i32_0 = arith.constant 0 : i32
    %c0_i32_1 = arith.constant 0 : i32
    return %c0_i32, %c0_i32_0 : i32, i32
  }
  func.func @transform_9(%arg0: i32) -> (i32, i32) {
    %c0_i32 = arith.constant 0 : i32
    %c0_i32_0 = arith.constant 0 : i32
    %c0_i32_1 = arith.constant 0 : i32
    return %c0_i32, %c0_i32_0 : i32, i32
  }
  func.func @transform_10(%arg0: i32) -> (i32, i32) {
    %c0_i32 = arith.constant 0 : i32
    %c0_i32_0 = arith.constant 0 : i32
    %c0_i32_1 = arith.constant 0 : i32
    return %c0_i32, %c0_i32_0 : i32, i32
  }
  func.func @transform_11(%arg0: i32) -> (i32, i32) {
    %c0_i32 = arith.constant 0 : i32
    %c0_i32_0 = arith.constant 0 : i32
    %c0_i32_1 = arith.constant 0 : i32
    return %c0_i32, %c0_i32_0 : i32, i32
  }
  func.func @transform_12(%arg0: i32) -> (i32, i32) {
    %c0_i32 = arith.constant 0 : i32
    %c0_i32_0 = arith.constant 0 : i32
    return %arg0, %c0_i32 : i32, i32
  }
}

</mosaic_0001>

<bundles_post_ra>
// kernel: tpu_custom_call.1
= control target key start
LH: loop header
LB: loop body
LE: loop exit
PB: predicated region body
PF: predicated region fallthrough
CT: control target
= control target key end

     0   :  { %v90_v0 = vlaneseq  ;;  %v3957_v3 = vmov 1983009808   ;;  %v3958_v5 = vmov 0   ;;  %vm133_vm0 = vcmask 1041408   ;;  %s5180_s3 = inlined_call_operand.vmem [shape: bf16[4,1024], index: 3, kind: input, shape index: {}]   ;;  %s5181_s1 = inlined_call_operand.vmem [shape: bf16[64,4], index: 1, kind: input, shape index: {}]   ;;  %s5182_s0 = inlined_call_operand.vmem [shape: bf16[64,8], index: 0, kind: input, shape index: {}]   ;;  %s5183_s2 = inlined_call_operand.vmem [shape: bf16[8,1024], index: 2, kind: input, shape index: {}]   ;;  %s5184_s5 = inlined_call_operand.vmem [shape: bf16[512,300], index: 5, kind: input, shape index: {}]   ;;  %s5185_s7 = inlined_call_operand.vmem [shape: bf16[512,300], index: 7, kind: input, shape index: {}]   ;;  %s5186_s4 = inlined_call_operand.vmem [shape: f32[1,1024], index: 4, kind: input, shape index: {}]   ;;  %s5187_s6 = inlined_call_operand.vmem [shape: f32[1,300], index: 6, kind: input, shape index: {}]   ;;  %s5188_s9 = inlined_call_operand.vmem [shape: f32[1,300], index: 9, kind: input, shape index: {}]   ;;  %s5189_s8 = inlined_call_operand.vmem [shape: f32[1,300], index: 8, kind: input, shape index: {}]   ;;  %s5190_s10 = inlined_call_operand.vmem [shape: f32[1,300], index: 10, kind: input, shape index: {}]   ;;  %s5191_s11 = inlined_call_operand.vmem [shape: f32[1,2], index: 11, kind: input, shape index: {}]   ;;  %s5192_s12 = inlined_call_operand.vmem [shape: f32[64,2], index: 12, kind: output, shape index: {}]  }
   0x1   :  { %v62_v1 = vld [vmem:[%s5180_s3] sm:$0xff]  ;;  %v63_v2 = vld [vmem:[%s5180_s3 + $0x8] sm:$0xff]  ;;  %v88_v4 = vunpack.c.l.s4 %v3957_v3  ;;  %190 = vmatprep.mubr.bf16.mxu0 %v3958_v5  ;;  %263 = vmatprep.mubr.bf16.mxu1 %v3958_v5  ;;  %vm120_vm1 = vcmask 31744   ;;  %vm503_vm2 = vcmask 1043456   ;;  %v3687_v29 = vld [vmem:[%s5181_s1 + $0x10] sm:$0xff]   ;;  %vm490_vm3 = vcmask 64512  }
   0x2   :  { %v4032_v6 = vshrl.u32 %v90_v0, 7  ;;  %v103_v8 = vcombine.high %v63_v2, %v63_v2  ;;  %v86_v9 = vcombine.high %v62_v1, %v62_v1  ;;  %v3685_v19 = vld [vmem:[%s5181_s1] sm:$0xff]   ;;  %v51_v23 = vld [vmem:[%s5183_s2 + $0x8] sm:$0xff]  ;;  %v3688_v30 = vld [vmem:[%s5181_s1 + $0x18] sm:$0xff]   ;;  %vm2978_vm4 = vcmask 359424  }
   0x3   :  { %v89_v7 = vunpack.c.0.s8 %v88_v4  ;;  %v50_v22 = vld [vmem:[%s5183_s2] sm:$0xff]  ;;  %v3175_v27 = vcombine.high %v51_v23, %v51_v23  ;;  %v3686_v28 = vld [vmem:[%s5181_s1 + $0x8] sm:$0xff]   ;;  %v52_v32 = vld [vmem:[%s5183_s2 + $0x10] sm:$0xff]  ;;  %v3174_v34 = vcombine.low %v51_v23, %v51_v23  ;;  %vm3122_vm5 = vcmask 7168  }
   0x4   :  { %v3173_v26 = vcombine.high %v50_v22, %v50_v22  ;;  %v3172_v31 = vcombine.low %v50_v22, %v50_v22  ;;  %v53_v33 = vld [vmem:[%s5183_s2 + $0x18] sm:$0xff]  ;;  %v3177_v37 = vcombine.high %v52_v32, %v52_v32  ;;  %v3176_v39 = vcombine.low %v52_v32, %v52_v32  ;;  %v3693_v41 = vld [vmem:[%s5182_s0] sm:$0xff]   ;;  %v3728_v45 = vld [vmem:[%s5184_s5 + $0xc8] ss:$12 sps:$4 sm:$0xff]  }
   0x5   :  { %v92_v10 = vsub.s32 %v89_v7, %v4032_v6  ;;  %v511_v36 = vsel %vm503_vm2, %v3174_v34, 0  ;;  %v3179_v38 = vcombine.high %v53_v33, %v53_v33  ;;  %v3178_v40 = vcombine.low %v53_v33, %v53_v33  ;;  %v3703_v44 = vld [vmem:[%s5184_s5 + $0x4] ss:$12 sps:$4 sm:$0xff]   ;;  %v3694_v46 = vld [vmem:[%s5182_s0 + $0x8] sm:$0xff]   ;;  %v4137_v48 = vld [vmem:[%s5182_s0 + $0x18] sm:$0xff]  }
   0x6   :  { %v505_v35 = vsel %vm503_vm2, %v3172_v31, 0  ;;  %v517_v42 = vsel %vm503_vm2, %v3176_v39, 0  ;;  %v3695_v47 = vld [vmem:[%s5182_s0 + $0x10] sm:$0xff]   ;;  %v3701_v49 = vld [vmem:[%s5184_s5] ss:$12 sps:$4 sm:$0xff]   ;;  %v4306_v34 = vsub.s32 0, %v4032_v6 }
   0x7   :  { %v93_v11 = vrot.slane %v62_v1, %v92_v10  ;;  %v110_v12 = vrot.slane %v63_v2, %v92_v10  ;;  %v100_v13 = vrot.slane %v86_v9, %v92_v10  ;;  %v117_v14 = vrot.slane %v103_v8, %v92_v10  ;;  %v3729_v50 = vld [vmem:[%s5184_s5 + $0x8] ss:$12 sps:$4 sm:$0xff]   ;;  %v3733_v52 = vld [vmem:[%s5184_s5 + $0xe0] ss:$12 sps:$4 sm:$0xff]   ;;  %v3704_v53 = vld [vmem:[%s5184_s5 + $0x18] ss:$12 sps:$4 sm:$0xff]  }
   0x8   :  { %v523_v43 = vsel %vm503_vm2, %v3178_v40, 0  ;;  %v3706_v51 = vld [vmem:[%s5184_s5 + $0x1c] ss:$12 sps:$4 sm:$0xff]   ;;  %v3734_v54 = vld [vmem:[%s5184_s5 + $0x20] ss:$12 sps:$4 sm:$0xff]   ;;  %vm3131_vm6 = vcmask 15368  }
   0x9   :  { %v101_v15 = vcombine.high %v93_v11, %v93_v11  ;;  %v102_v16 = vcombine.high %v100_v13, %v100_v13  ;;  %v135_v17 = vsel %vm133_vm0, %v93_v11, 0  ;;  %v141_v18 = vsel %vm133_vm0, %v100_v13, 0  ;;  %v3709_v55 = vld [vmem:[%s5184_s5 + $0x34] ss:$12 sps:$4 sm:$0xff]   ;;  %v3738_v56 = vld [vmem:[%s5184_s5 + $0xf8] ss:$12 sps:$4 sm:$0xff]  }
   0xa   :  { %v118_v20 = vcombine.high %v110_v12, %v110_v12  ;;  %v119_v21 = vcombine.high %v117_v14, %v117_v14  ;;  %v147_v24 = vsel %vm133_vm0, %v110_v12, 0  ;;  %v153_v25 = vsel %vm133_vm0, %v117_v14, 0  ;;  %v3707_v57 = vld [vmem:[%s5184_s5 + $0x30] ss:$12 sps:$4 sm:$0xff]   ;;  %v3739_v58 = vld [vmem:[%s5184_s5 + $0x38] ss:$12 sps:$4 sm:$0xff]  }
   0xb   :  { %3148 = vmatprep.subr.msk.bf16.mxu0 %vm133_vm0, %v101_v15  ;;  %3153 = vmatprep.subr.msk.bf16.mxu1 %vm133_vm0, %v102_v16  ;;  %v3712_v59 = vld [vmem:[%s5184_s5 + $0x4c] ss:$12 sps:$4 sm:$0xff]   ;;  %v3743_v60 = vld [vmem:[%s5184_s5 + $0x110] ss:$12 sps:$4 sm:$0xff]   ;;  %v3710_v61 = vld [vmem:[%s5184_s5 + $0x48] ss:$12 sps:$4 sm:$0xff]  }
   0xc   :  { %159 = vmatpush1.bf16.msra.mxu0 %v135_v17  ;;  %232 = vmatpush1.bf16.msra.mxu1 %v141_v18  ;;  %v3744_v62 = vld [vmem:[%s5184_s5 + $0x50] ss:$12 sps:$4 sm:$0xff]   ;;  %v3748_v0 = vld [vmem:[%s5184_s5 + $0x128] ss:$12 sps:$4 sm:$0xff]   ;;  %v3713_v1 = vld [vmem:[%s5184_s5 + $0x60] ss:$12 sps:$4 sm:$0xff]  }
   0xd   :  { %3158 = vmatprep.subr.msk.bf16.mxu0 %vm133_vm0, %v118_v20  ;;  %3163 = vmatprep.subr.msk.bf16.mxu1 %vm133_vm0, %v119_v21  ;;  %v3715_v63 = vld [vmem:[%s5184_s5 + $0x64] ss:$12 sps:$4 sm:$0xff]   ;;  %v3749_v2 = vld [vmem:[%s5184_s5 + $0x68] ss:$12 sps:$4 sm:$0xff]   ;;  %v3753_v4 = vld [vmem:[%s5184_s5 + $0x140] ss:$12 sps:$4 sm:$0xff]  }
   0xe   :  { %v3718_v3 = vld [vmem:[%s5184_s5 + $0x7c] ss:$12 sps:$4 sm:$0xff]   ;;  %v3716_v7 = vld [vmem:[%s5184_s5 + $0x78] ss:$12 sps:$4 sm:$0xff]   ;;  %v3754_v8 = vld [vmem:[%s5184_s5 + $0x80] ss:$12 sps:$4 sm:$0xff]  }
   0xf   :  { %3149 = vmatmul.mubr.msk.bf16.vlgmr.msra.gmra.mrb[0].mxu0 %vm120_vm1, %v3685_v19  ;;  %3154 = vmatmul.mubr.msk.bf16.vlgmr.msra.gmra.mrb[0].mxu1 %vm120_vm1, %v3685_v19  ;;  %v3721_v9 = vld [vmem:[%s5184_s5 + $0x94] ss:$12 sps:$4 sm:$0xff]   ;;  %v3724_v10 = vld [vmem:[%s5184_s5 + $0xac] ss:$12 sps:$4 sm:$0xff]   ;;  %v3727_v12 = vld [vmem:[%s5184_s5 + $0xc4] ss:$12 sps:$4 sm:$0xff]  }
  0x10   :  { %305 = vmatpush1.bf16.msra.mxu0 %v147_v24  ;;  %200 = vmatprep.mubr.bf16.mxu0 %v3958_v5  ;;  %v3722_v11 = vld [vmem:[%s5184_s5 + $0xa8] ss:$12 sps:$4 sm:$0xff]   ;;  %v3725_v13 = vld [vmem:[%s5184_s5 + $0xc0] ss:$12 sps:$4 sm:$0xff]   ;;  %v3730_v15 = vld [vmem:[%s5184_s5 + $0xd8] ss:$12 sps:$4 sm:$0xff]  }
  0x11   :  { %273 = vmatprep.mubr.bf16.mxu1 %v3958_v5  ;;  %378 = vmatpush1.bf16.msra.mxu1 %v153_v25  ;;  %v3732_v14 = vld [vmem:[%s5184_s5 + $0xdc] ss:$12 sps:$4 sm:$0xff]   ;;  %v3737_v16 = vld [vmem:[%s5184_s5 + $0xf4] ss:$12 sps:$4 sm:$0xff]   ;;  %v3742_v18 = vld [vmem:[%s5184_s5 + $0x10c] ss:$12 sps:$4 sm:$0xff]  }
  0x12   :  { %3180 = vmatprep.subr.msk.bf16.mxu0 %vm503_vm2, %v3173_v26  ;;  %3185 = vmatprep.subr.msk.bf16.mxu1 %vm503_vm2, %v3175_v27  ;;  %v3735_v17 = vld [vmem:[%s5184_s5 + $0xf0] ss:$12 sps:$4 sm:$0xff]   ;;  %v3745_v21 = vld [vmem:[%s5184_s5 + $0x120] ss:$12 sps:$4 sm:$0xff]   ;;  %v3750_v23 = vld [vmem:[%s5184_s5 + $0x138] ss:$12 sps:$4 sm:$0xff]  }
  0x13   :  { %v3747_v20 = vld [vmem:[%s5184_s5 + $0x124] ss:$12 sps:$4 sm:$0xff]   ;;  %v3752_v22 = vld [vmem:[%s5184_s5 + $0x13c] ss:$12 sps:$4 sm:$0xff]   ;;  %v3757_v24 = vld [vmem:[%s5184_s5 + $0x154] ss:$12 sps:$4 sm:$0xff]  }
  0x14   :  { %v3758_v25 = vld [vmem:[%s5184_s5 + $0x158] ss:$12 sps:$4 sm:$0xff]   ;;  %v3755_v27 = vld [vmem:[%s5184_s5 + $0x150] ss:$12 sps:$4 sm:$0xff]   ;;  %v3760_v31 = vld [vmem:[%s5184_s5 + $0x168] ss:$12 sps:$4 sm:$0xff]  }
  0x15   :  { %v3759_v26 = vld [vmem:[%s5184_s5 + $0x98] ss:$12 sps:$4 sm:$0xff]   ;;  %v3768_v33 = vld [vmem:[%s5184_s5 + $0x248] ss:$12 sps:$4 sm:$0xff]  }
  0x16   :  { %v3767_v32 = vld [vmem:[%s5184_s5 + $0x184] ss:$12 sps:$4 sm:$0xff]  }
  0x17   :  { %3150 = vmatmul.mubr.msk.bf16.gmra.mrb[4].mxu0 %vm120_vm1, %v3686_v28  ;;  %3155 = vmatmul.mubr.msk.bf16.gmra.mrb[4].mxu1 %vm120_vm1, %v3686_v28 }
  0x18   :  { %210 = vmatprep.mubr.bf16.mxu0 %v3958_v5  ;;  %283 = vmatprep.mubr.bf16.mxu1 %v3958_v5 }
  0x1f   :  { %3151 = vmatmul.mubr.msk.bf16.gmra.mrb[8].mxu0 %vm120_vm1, %v3687_v29  ;;  %3156 = vmatmul.mubr.msk.bf16.gmra.mrb[8].mxu1 %vm120_vm1, %v3687_v29 }
  0x20   :  { %220 = vmatprep.mubr.bf16.mxu0 %v3958_v5  ;;  %293 = vmatprep.mubr.bf16.mxu1 %v3958_v5 }
  0x27   :  { %3152 = vmatmul.mubr.msk.bf16.gmra.mrb[12].mxu0 %vm120_vm1, %v3688_v30  ;;  %3157 = vmatmul.mubr.msk.bf16.gmra.mrb[12].mxu1 %vm120_vm1, %v3688_v30 }
  0x28   :  { %336 = vmatprep.mubr.bf16.mxu0 %v3958_v5  ;;  %409 = vmatprep.mubr.bf16.mxu1 %v3958_v5 }
  0x2f   :  { %3159 = vmatmul.mubr.msk.bf16.vlgmr.msra.gmra.mrb[16].mxu0 %vm120_vm1, %v3685_v19  ;;  %3164 = vmatmul.mubr.msk.bf16.vlgmr.msra.gmra.mrb[16].mxu1 %vm120_vm1, %v3685_v19  ;;  %v3740_v19 = vld [vmem:[%s5184_s5 + $0x108] ss:$12 sps:$4 sm:$0xff]  }
  0x30   :  { %529 = vmatpush1.bf16.msra.mxu0 %v505_v35  ;;  %346 = vmatprep.mubr.bf16.mxu0 %v3958_v5  ;;  %v4309_v35 = vsub.s32 2, %v4032_v6 }
  0x31   :  { %419 = vmatprep.mubr.bf16.mxu1 %v3958_v5  ;;  %602 = vmatpush1.bf16.msra.mxu1 %v511_v36  ;;  %v4314_v36 = vld [vmem:[%s5186_s4] sm:$0xff] }
  0x32   :  { %3190 = vmatprep.subr.msk.bf16.mxu0 %vm503_vm2, %v3177_v37  ;;  %3195 = vmatprep.subr.msk.bf16.mxu1 %vm503_vm2, %v3179_v38  ;;  %v4317_v37 = vsub.s32 1, %v4032_v6  ;;  %v836_v38 = vsub.s32 3, %v4032_v6  ;;  %v4322_v39 = vrot.slane %v4314_v36, %v4306_v34  ;;  %v4326_v40 = vrot.slane %v4314_v36, %v4309_v35 }
  0x37   :  { %3160 = vmatmul.mubr.msk.bf16.gmra.mrb[20].mxu0 %vm120_vm1, %v3686_v28  ;;  %3165 = vmatmul.mubr.msk.bf16.gmra.mrb[20].mxu1 %vm120_vm1, %v3686_v28  ;;  %v3762_v28 = vld [vmem:[%s5184_s5 + $0x16c] ss:$12 sps:$4 sm:$0xff]  }
  0x38   :  { %356 = vmatprep.mubr.bf16.mxu0 %v3958_v5  ;;  %429 = vmatprep.mubr.bf16.mxu1 %v3958_v5 }
  0x3f   :  { %3161 = vmatmul.mubr.msk.bf16.gmra.mrb[24].mxu0 %vm120_vm1, %v3687_v29  ;;  %3166 = vmatmul.mubr.msk.bf16.gmra.mrb[24].mxu1 %vm120_vm1, %v3687_v29  ;;  %v3763_v29 = vld [vmem:[%s5184_s5 + $0x170] ss:$12 sps:$4 sm:$0xff]  }
  0x40   :  { %366 = vmatprep.mubr.bf16.mxu0 %v3958_v5  ;;  %439 = vmatprep.mubr.bf16.mxu1 %v3958_v5 }
  0x47   :  { %3162 = vmatmul.mubr.msk.bf16.gmra.mrb[28].mxu0 %vm120_vm1, %v3688_v30  ;;  %3167 = vmatmul.mubr.msk.bf16.gmra.mrb[28].mxu1 %vm120_vm1, %v3688_v30  ;;  %v3764_v30 = vld [vmem:[%s5184_s5 + $0xb0] ss:$12 sps:$4 sm:$0xff]  }
  0x48   :  { %560 = vmatprep.mubr.bf16.mxu0 %v3958_v5  ;;  %633 = vmatprep.mubr.bf16.mxu1 %v3958_v5 }
  0x4f   :  { %3181 = vmatmul.mubr.msk.bf16.vlgmr.msra.gmra.mrb[0].mxu0 %vm490_vm3, %v3693_v41  ;;  %3186 = vmatmul.mubr.msk.bf16.vlgmr.msra.gmra.mrb[0].mxu1 %vm490_vm3, %v3693_v41 }
  0x50   :  { %570 = vmatprep.mubr.bf16.mxu0 %v3958_v5  ;;  %643 = vmatprep.mubr.bf16.mxu1 %v3958_v5 }
  0x51   :  { %675 = vmatpush1.bf16.msra.mxu0 %v517_v42  ;;  %748 = vmatpush1.bf16.msra.mxu1 %v523_v43  ;;  %v4333_v42 = vrot.slane %v4314_v36, %v836_v38 }
  0x52   :  { %1679 = vmatprep.subr.bf16.mxu0 %v3703_v44  ;;  %3393 = vmatprep.subr.bf16.mxu1 %v3728_v45 }
  0x57   :  { %3182 = vmatmul.mubr.msk.bf16.gmra.mrb[4].mxu0 %vm490_vm3, %v3694_v46  ;;  %3187 = vmatmul.mubr.msk.bf16.gmra.mrb[4].mxu1 %vm490_vm3, %v3694_v46 }
  0x58   :  { %580 = vmatprep.mubr.bf16.mxu0 %v3958_v5  ;;  %653 = vmatprep.mubr.bf16.mxu1 %v3958_v5 }
  0x5f   :  { %3183 = vmatmul.mubr.msk.bf16.gmra.mrb[8].mxu0 %vm490_vm3, %v3695_v47  ;;  %3188 = vmatmul.mubr.msk.bf16.gmra.mrb[8].mxu1 %vm490_vm3, %v3695_v47 }
  0x60   :  { %590 = vmatprep.mubr.bf16.mxu0 %v3958_v5  ;;  %663 = vmatprep.mubr.bf16.mxu1 %v3958_v5 }
  0x67   :  { %3184 = vmatmul.mubr.msk.bf16.gmra.mrb[12].mxu0 %vm490_vm3, %v4137_v48  ;;  %3189 = vmatmul.mubr.msk.bf16.gmra.mrb[12].mxu1 %vm490_vm3, %v4137_v48 }
  0x68   :  { %706 = vmatprep.mubr.bf16.mxu0 %v3958_v5  ;;  %779 = vmatprep.mubr.bf16.mxu1 %v3958_v5 }
  0x6f   :  { %3191 = vmatmul.mubr.msk.bf16.vlgmr.msra.gmra.mrb[16].mxu0 %vm490_vm3, %v3693_v41  ;;  %3196 = vmatmul.mubr.msk.bf16.vlgmr.msra.gmra.mrb[16].mxu1 %vm490_vm3, %v3693_v41  ;;  %v4330_v41 = vrot.slane %v4314_v36, %v4317_v37 }
  0x70   :  { %716 = vmatprep.mubr.bf16.mxu0 %v3958_v5  ;;  %789 = vmatprep.mubr.bf16.mxu1 %v3958_v5 }
  0x71   :  { %1680 = vmatpush1.bf16.msra.mxu0 %v3701_v49  ;;  %3394 = vmatpush3.bf16.msra.mxu1 %v3729_v50 }
  0x72   :  { %1681 = vmatprep.subr.bf16.mxu0 %v3706_v51  ;;  %3395 = vmatprep.subr.bf16.mxu1 %v3733_v52 }
  0x75   :  { %1682 = vmatpush1.bf16.msra.mxu0 %v3704_v53  ;;  %3396 = vmatpush3.bf16.msra.mxu1 %v3734_v54 }
  0x76   :  { %1683 = vmatprep.subr.bf16.mxu0 %v3709_v55  ;;  %3397 = vmatprep.subr.bf16.mxu1 %v3738_v56 }
  0x77   :  { %3192 = vmatmul.mubr.msk.bf16.gmra.mrb[20].mxu0 %vm490_vm3, %v3694_v46  ;;  %3197 = vmatmul.mubr.msk.bf16.gmra.mrb[20].mxu1 %vm490_vm3, %v3694_v46 }
  0x78   :  { %726 = vmatprep.mubr.bf16.mxu0 %v3958_v5  ;;  %799 = vmatprep.mubr.bf16.mxu1 %v3958_v5 }
  0x79   :  { %1684 = vmatpush1.bf16.msra.mxu0 %v3707_v57  ;;  %3398 = vmatpush3.bf16.msra.mxu1 %v3739_v58 }
  0x7a   :  { %1685 = vmatprep.subr.bf16.mxu0 %v3712_v59  ;;  %3399 = vmatprep.subr.bf16.mxu1 %v3743_v60 }
  0x7d   :  { %1686 = vmatpush1.bf16.msra.mxu0 %v3710_v61  ;;  %3400 = vmatpush3.bf16.msra.mxu1 %v3744_v62 }
  0x7e   :  { %1687 = vmatprep.subr.bf16.mxu0 %v3715_v63  ;;  %3401 = vmatprep.subr.bf16.mxu1 %v3748_v0 }
  0x7f   :  { %3193 = vmatmul.mubr.msk.bf16.gmra.mrb[24].mxu0 %vm490_vm3, %v3695_v47  ;;  %3198 = vmatmul.mubr.msk.bf16.gmra.mrb[24].mxu1 %vm490_vm3, %v3695_v47 }
  0x80   :  { %736 = vmatprep.mubr.bf16.mxu0 %v3958_v5  ;;  %809 = vmatprep.mubr.bf16.mxu1 %v3958_v5  ;;  %v3719_v5 = vld [vmem:[%s5184_s5 + $0x90] ss:$12 sps:$4 sm:$0xff]  }
  0x81   :  { %1688 = vmatpush1.bf16.msra.mxu0 %v3713_v1  ;;  %3402 = vmatpush3.bf16.msra.mxu1 %v3749_v2 }
  0x82   :  { %1689 = vmatprep.subr.bf16.mxu0 %v3718_v3  ;;  %3403 = vmatprep.subr.bf16.mxu1 %v3753_v4 }
  0x85   :  { %1690 = vmatpush1.bf16.msra.mxu0 %v3716_v7  ;;  %3404 = vmatpush3.bf16.msra.mxu1 %v3754_v8 }
  0x86   :  { %1691 = vmatprep.subr.bf16.mxu0 %v3721_v9  ;;  %3405 = vmatprep.subr.bf16.mxu1 %v3758_v25 }
  0x87   :  { %3194 = vmatmul.mubr.msk.bf16.gmra.mrb[28].mxu0 %vm490_vm3, %v4137_v48  ;;  %3199 = vmatmul.mubr.msk.bf16.gmra.mrb[28].mxu1 %vm490_vm3, %v4137_v48 }
  0x89   :  { %1692 = vmatpush1.bf16.msra.mxu0 %v3719_v5  ;;  %3406 = vmatpush3.bf16.msra.mxu1 %v3759_v26 }
  0x8a   :  { %1693 = vmatprep.subr.bf16.mxu0 %v3724_v10  ;;  %3407 = vmatprep.subr.bf16.mxu1 %v3763_v29  ;;  %v3765_v10 = vld [vmem:[%s5184_s5 + $0x180] ss:$12 sps:$4 sm:$0xff]  }
  0x8b   :  { %v3774_v29 = vld [vmem:[%s5184_s5 + $0x1a0] ss:$12 sps:$4 sm:$0xff]  }
  0x8d   :  { %1694 = vmatpush1.bf16.msra.mxu0 %v3722_v11  ;;  %3408 = vmatpush3.bf16.msra.mxu1 %v3764_v30  ;;  %v3769_v11 = vld [vmem:[%s5184_s5 + $0x188] ss:$12 sps:$4 sm:$0xff]  }
  0x8e   :  { %1695 = vmatprep.subr.bf16.mxu0 %v3727_v12  ;;  %3433 = vmatprep.subr.bf16.mxu1 %v3768_v33  ;;  %v3777_v30 = vld [vmem:[%s5184_s5 + $0x1b4] ss:$12 sps:$4 sm:$0xff]  }
  0x91   :  { %1696 = vmatpush1.bf16.msra.mxu0 %v3725_v13 }
  0x92   :  { %1697 = vmatprep.subr.bf16.mxu0 %v3732_v14 }
  0x95   :  { %1698 = vmatpush1.bf16.msra.mxu0 %v3730_v15 }
  0x96   :  { %1699 = vmatprep.subr.bf16.mxu0 %v3737_v16  ;;  %v3772_v16 = vld [vmem:[%s5184_s5 + $0x19c] ss:$12 sps:$4 sm:$0xff]  }
  0x99   :  { %1700 = vmatpush1.bf16.msra.mxu0 %v3735_v17  ;;  %v3773_v17 = vld [vmem:[%s5184_s5 + $0x260] ss:$12 sps:$4 sm:$0xff]  }
  0x9a   :  { %1701 = vmatprep.subr.bf16.mxu0 %v3742_v18 }
  0x9d   :  { %1702 = vmatpush1.bf16.msra.mxu0 %v3740_v19 }
  0x9e   :  { %1703 = vmatprep.subr.bf16.mxu0 %v3747_v20 }
  0xa1   :  { %1704 = vmatpush1.bf16.msra.mxu0 %v3745_v21 }
  0xa2   :  { %1705 = vmatprep.subr.bf16.mxu0 %v3752_v22 }
  0xa5   :  { %1706 = vmatpush1.bf16.msra.mxu0 %v3750_v23 }
  0xa6   :  { %1707 = vmatprep.subr.bf16.mxu0 %v3757_v24 }
  0xa9   :  { %1708 = vmatpush1.bf16.msra.mxu0 %v3755_v27 }
  0xaa   :  { %1709 = vmatprep.subr.bf16.mxu0 %v3762_v28  ;;  %v3770_v28 = vld [vmem:[%s5184_s5 + $0x198] ss:$12 sps:$4 sm:$0xff]  }
  0xad   :  { %1710 = vmatpush1.bf16.msra.mxu0 %v3760_v31 }
  0xae   :  { %1752 = vmatprep.subr.bf16.mxu0 %v3767_v32 }
 0x122   :  { %v562_v43 = vpop.f32.mrb[0].mxu0  ;;  %v635_v44 = vpop.f32.mrb[0].mxu1 }
 0x123   :  { %v862_v45 = vadd.f32 %v4322_v39, %v562_v43  ;;  %v864_v46 = vadd.f32 %v4326_v40, %v635_v44  ;;  %v564_v47 = vpop.f32.mrb[1].mxu0  ;;  %v637_v48 = vpop.f32.mrb[1].mxu1  ;;  %v3778_v43 = vld [vmem:[%s5184_s5 + $0x278] ss:$12 sps:$4 sm:$0xff]  }
 0x124   :  { %v863_v49 = vadd.f32 %v4330_v41, %v564_v47  ;;  %v865_v50 = vadd.f32 %v4333_v42, %v637_v48  ;;  %v566_v51 = vpop.f32.mrb[2].mxu0  ;;  %v639_v52 = vpop.f32.mrb[2].mxu1 }
 0x125   :  { %v870_v53 = vadd.f32 %v4322_v39, %v566_v51  ;;  %v872_v54 = vadd.f32 %v4326_v40, %v639_v52  ;;  %v568_v55 = vpop.f32.mrb[3].mxu0  ;;  %v641_v56 = vpop.f32.mrb[3].mxu1  ;;  %v926_v59 = vmax.f32 %v862_v45, 0.0  ;;  %v928_v60 = vmax.f32 %v864_v46, 0.0 }
 0x126   :  { %v871_v57 = vadd.f32 %v4330_v41, %v568_v55  ;;  %v873_v58 = vadd.f32 %v4333_v42, %v641_v56  ;;  %v927_v63 = vmax.f32 %v863_v49, 0.0  ;;  %v929_v0 = vmax.f32 %v865_v50, 0.0  ;;  %v3779_v55 = vld [vmem:[%s5184_s5 + $0x1b8] ss:$12 sps:$4 sm:$0xff]  }
 0x127   :  { %v934_v61 = vmax.f32 %v870_v53, 0.0  ;;  %v936_v62 = vmax.f32 %v872_v54, 0.0  ;;  %v3775_v54 = vld [vmem:[%s5184_s5 + $0x1b0] ss:$12 sps:$4 sm:$0xff]  }
 0x128   :  { %v935_v1 = vmax.f32 %v871_v57, 0.0  ;;  %v937_v2 = vmax.f32 %v873_v58, 0.0 }
 0x129   :  { %v990_v3 = vpack.c.bf16 %v934_v61, %v926_v59  ;;  %v4343_v4 = vpack.c.bf16 %v936_v62, %v928_v60  ;;  %v3782_v60 = vld [vmem:[%s5184_s5 + $0x1cc] ss:$12 sps:$4 sm:$0xff]   ;;  %v3783_v61 = vld [vmem:[%s5184_s5 + $0x290] ss:$12 sps:$4 sm:$0xff]  }
 0x12a   :  { %v991_v7 = vpack.c.bf16 %v935_v1, %v927_v63  ;;  %v4345_v8 = vpack.c.bf16 %v937_v2, %v929_v0  ;;  %v572_v9 = vpop.f32.mrb[4].mxu0  ;;  %v645_v5 = vpop.f32.mrb[4].mxu1 }
 0x12b   :  { %v878_v12 = vadd.f32 %v4322_v39, %v572_v9  ;;  %v880_v13 = vadd.f32 %v4326_v40, %v645_v5  ;;  %v574_v14 = vpop.f32.mrb[5].mxu0  ;;  %v647_v15 = vpop.f32.mrb[5].mxu1  ;;  %v3780_v5 = vld [vmem:[%s5184_s5 + $0x1c8] ss:$12 sps:$4 sm:$0xff]  }
 0x12c   :  { %v879_v18 = vadd.f32 %v4330_v41, %v574_v14  ;;  %v881_v19 = vadd.f32 %v4333_v42, %v647_v15  ;;  %v576_v20 = vpop.f32.mrb[6].mxu0  ;;  %v649_v21 = vpop.f32.mrb[6].mxu1  ;;  %1711 = vmatprep.mubr.bf16.mxu0 %v991_v7  ;;  %1857 = vmatprep.mubr.bf16.mxu1 %v991_v7  ;;  %v840_v14 = vsub.s32 4, %v4032_v6  ;;  %v848_v15 = vsub.s32 6, %v4032_v6 }
 0x12d   :  { %v886_v22 = vadd.f32 %v4322_v39, %v576_v20  ;;  %v888_v23 = vadd.f32 %v4326_v40, %v649_v21  ;;  %v578_v24 = vpop.f32.mrb[7].mxu0  ;;  %v651_v25 = vpop.f32.mrb[7].mxu1  ;;  %1712 = vmatmul.mubr.bf16.vlgmr.msra.gmra.mrb[32].mxu0 %v990_v3  ;;  %1858 = vmatmul.mubr.bf16.vlgmr.msra.gmra.mrb[32].mxu1 %v990_v3  ;;  %v942_v31 = vmax.f32 %v878_v12, 0.0  ;;  %v944_v32 = vmax.f32 %v880_v13, 0.0  ;;  %v3784_v12 = vld [vmem:[%s5184_s5 + $0x1d0] ss:$12 sps:$4 sm:$0xff]  }
 0x12e   :  { %v887_v26 = vadd.f32 %v4330_v41, %v578_v24  ;;  %v889_v27 = vadd.f32 %v4333_v42, %v651_v25  ;;  %1753 = vmatpush1.bf16.msra.mxu0 %v3765_v10  ;;  %3434 = vmatpush3.bf16.msra.mxu1 %v3769_v11  ;;  %v943_v44 = vmax.f32 %v879_v18, 0.0  ;;  %v945_v45 = vmax.f32 %v881_v19, 0.0  ;;  %v3787_v13 = vld [vmem:[%s5184_s5 + $0x1e4] ss:$12 sps:$4 sm:$0xff]   ;;  %v3788_v20 = vld [vmem:[%s5184_s5 + $0x2a8] ss:$12 sps:$4 sm:$0xff]  }
 0x12f   :  { %v950_v33 = vmax.f32 %v886_v22, 0.0  ;;  %v952_v38 = vmax.f32 %v888_v23, 0.0  ;;  %1754 = vmatprep.subr.bf16.mxu0 %v3772_v16  ;;  %3435 = vmatprep.subr.bf16.mxu1 %v3773_v17 }
 0x130   :  { %v951_v46 = vmax.f32 %v887_v26, 0.0  ;;  %v953_v47 = vmax.f32 %v889_v27, 0.0  ;;  %v3785_v27 = vld [vmem:[%s5184_s5 + $0x1e0] ss:$12 sps:$4 sm:$0xff]  }
 0x131   :  { %v998_v48 = vpack.c.bf16 %v950_v33, %v942_v31  ;;  %v4379_v49 = vpack.c.bf16 %v952_v38, %v944_v32  ;;  %v3789_v33 = vld [vmem:[%s5184_s5 + $0x1e8] ss:$12 sps:$4 sm:$0xff]   ;;  %v852_v38 = vsub.s32 7, %v4032_v6 }
 0x132   :  { %v999_v50 = vpack.c.bf16 %v951_v46, %v943_v44  ;;  %v4381_v51 = vpack.c.bf16 %v953_v47, %v945_v45  ;;  %1755 = vmatpush1.bf16.msra.mxu0 %v3770_v28  ;;  %3436 = vmatpush3.bf16.msra.mxu1 %v3774_v29  ;;  %v582_v52 = vpop.f32.mrb[8].mxu0  ;;  %v655_v53 = vpop.f32.mrb[8].mxu1  ;;  %v844_v28 = vsub.s32 5, %v4032_v6  ;;  %v3792_v47 = vld [vmem:[%s5184_s5 + $0x1fc] ss:$12 sps:$4 sm:$0xff]  }
 0x133   :  { %v894_v56 = vadd.f32 %v4322_v39, %v582_v52  ;;  %v896_v57 = vadd.f32 %v4326_v40, %v655_v53  ;;  %v584_v58 = vpop.f32.mrb[9].mxu0  ;;  %v657_v59 = vpop.f32.mrb[9].mxu1  ;;  %1756 = vmatprep.subr.bf16.mxu0 %v3777_v30  ;;  %3437 = vmatprep.subr.bf16.mxu1 %v3778_v43 }
 0x134   :  { %v895_v62 = vadd.f32 %v4330_v41, %v584_v58  ;;  %v897_v63 = vadd.f32 %v4333_v42, %v657_v59  ;;  %v586_v0 = vpop.f32.mrb[10].mxu0  ;;  %v659_v1 = vpop.f32.mrb[10].mxu1  ;;  %1721 = vmatprep.mubr.bf16.mxu0 %v999_v50  ;;  %1865 = vmatprep.mubr.bf16.mxu1 %v999_v50  ;;  %v4438_v50 = vrot.slane %v4314_v36, %v840_v14 }
 0x135   :  { %v902_v2 = vadd.f32 %v4322_v39, %v586_v0  ;;  %v904_v3 = vadd.f32 %v4326_v40, %v659_v1  ;;  %v588_v7 = vpop.f32.mrb[11].mxu0  ;;  %v661_v9 = vpop.f32.mrb[11].mxu1  ;;  %1722 = vmatmul.mubr.bf16.gmra.mrb[36].mxu0 %v998_v48  ;;  %1866 = vmatmul.mubr.bf16.gmra.mrb[36].mxu1 %v998_v48  ;;  %v958_v16 = vmax.f32 %v894_v56, 0.0  ;;  %v960_v17 = vmax.f32 %v896_v57, 0.0  ;;  %v3793_v48 = vld [vmem:[%s5184_s5 + $0x2c0] ss:$12 sps:$4 sm:$0xff]  }
 0x136   :  { %v903_v10 = vadd.f32 %v4330_v41, %v588_v7  ;;  %v905_v11 = vadd.f32 %v4333_v42, %v661_v9  ;;  %1757 = vmatpush1.bf16.msra.mxu0 %v3775_v54  ;;  %3438 = vmatpush3.bf16.msra.mxu1 %v3779_v55  ;;  %v959_v21 = vmax.f32 %v895_v62, 0.0  ;;  %v961_v22 = vmax.f32 %v897_v63, 0.0  ;;  %v3790_v63 = vld [vmem:[%s5184_s5 + $0x1f8] ss:$12 sps:$4 sm:$0xff]   ;;  %v3797_v0 = vld [vmem:[%s5184_s5 + $0x214] ss:$12 sps:$4 sm:$0xff]  }
 0x137   :  { %v966_v18 = vmax.f32 %v902_v2, 0.0  ;;  %v968_v19 = vmax.f32 %v904_v3, 0.0  ;;  %1758 = vmatprep.subr.bf16.mxu0 %v3782_v60  ;;  %3439 = vmatprep.subr.bf16.mxu1 %v3783_v61  ;;  %v4443_v55 = vrot.slane %v4314_v36, %v848_v15  ;;  %v4448_v60 = vrot.slane %v4314_v36, %v844_v28  ;;  %v3798_v3 = vld [vmem:[%s5184_s5 + $0x2d8] ss:$12 sps:$4 sm:$0xff]   ;;  %v3803_v28 = vld [vmem:[%s5184_s5 + $0x2f0] ss:$12 sps:$4 sm:$0xff]  }
 0x138   :  { %v967_v23 = vmax.f32 %v903_v10, 0.0  ;;  %v969_v24 = vmax.f32 %v905_v11, 0.0 }
 0x139   :  { %v1006_v25 = vpack.c.bf16 %v966_v18, %v958_v16  ;;  %v4417_v26 = vpack.c.bf16 %v968_v19, %v960_v17  ;;  %v3795_v16 = vld [vmem:[%s5184_s5 + $0x210] ss:$12 sps:$4 sm:$0xff]   ;;  %v3799_v17 = vld [vmem:[%s5184_s5 + $0x218] ss:$12 sps:$4 sm:$0xff]  }
 0x13a   :  { %v1007_v29 = vpack.c.bf16 %v967_v23, %v959_v21  ;;  %v4423_v30 = vpack.c.bf16 %v969_v24, %v961_v22  ;;  %1759 = vmatpush1.bf16.msra.mxu0 %v3780_v5  ;;  %3440 = vmatpush3.bf16.msra.mxu1 %v3784_v12  ;;  %v592_v31 = vpop.f32.mrb[12].mxu0  ;;  %v665_v32 = vpop.f32.mrb[12].mxu1 }
 0x13b   :  { %v910_v43 = vadd.f32 %v4322_v39, %v592_v31  ;;  %v912_v44 = vadd.f32 %v4326_v40, %v665_v32  ;;  %v594_v45 = vpop.f32.mrb[13].mxu0  ;;  %v667_v46 = vpop.f32.mrb[13].mxu1  ;;  %1760 = vmatprep.subr.bf16.mxu0 %v3787_v13  ;;  %3441 = vmatprep.subr.bf16.mxu1 %v3788_v20 }
 0x13c   :  { %v911_v6 = vadd.f32 %v4330_v41, %v594_v45  ;;  %v913_v52 = vadd.f32 %v4333_v42, %v667_v46  ;;  %v596_v53 = vpop.f32.mrb[14].mxu0  ;;  %v669_v54 = vpop.f32.mrb[14].mxu1  ;;  %1731 = vmatprep.mubr.bf16.mxu0 %v1007_v29  ;;  %1873 = vmatprep.mubr.bf16.mxu1 %v1007_v29  ;;  %v3804_v45 = vld [vmem:[%s5184_s5 + $0x230] ss:$12 sps:$4 sm:$0xff]  }
 0x13d   :  { %v918_v56 = vadd.f32 %v4322_v39, %v596_v53  ;;  %v920_v57 = vadd.f32 %v4326_v40, %v669_v54  ;;  %v598_v58 = vpop.f32.mrb[15].mxu0  ;;  %v671_v59 = vpop.f32.mrb[15].mxu1  ;;  %1732 = vmatmul.mubr.bf16.gmra.mrb[40].mxu0 %v1006_v25  ;;  %1874 = vmatmul.mubr.bf16.gmra.mrb[40].mxu1 %v1006_v25  ;;  %v3794_v39 = vld [vmem:[%s5184_s5 + $0x200] ss:$12 sps:$4 sm:$0xff]   ;;  %v4459_v40 = vrot.slane %v4314_v36, %v852_v38  ;;  %v976_v1 = vmax.f32 %v912_v44, 0.0 }
 0x13e   :  { %v919_v61 = vadd.f32 %v4330_v41, %v598_v58  ;;  %v921_v62 = vadd.f32 %v4333_v42, %v671_v59  ;;  %1761 = vmatpush1.bf16.msra.mxu0 %v3785_v27  ;;  %3442 = vmatpush3.bf16.msra.mxu1 %v3789_v33  ;;  %v974_v41 = vmax.f32 %v910_v43, 0.0  ;;  %v975_v7 = vmax.f32 %v911_v6, 0.0  ;;  %v3802_v27 = vld [vmem:[%s5184_s5 + $0x22c] ss:$12 sps:$4 sm:$0xff]   ;;  %v3800_v44 = vld [vmem:[%s5184_s5 + $0x228] ss:$12 sps:$4 sm:$0xff]  }
 0x13f   :  { %v982_v42 = vmax.f32 %v918_v56, 0.0  ;;  %v984_v2 = vmax.f32 %v920_v57, 0.0  ;;  %1762 = vmatprep.subr.bf16.mxu0 %v3792_v47  ;;  %3443 = vmatprep.subr.bf16.mxu1 %v3793_v48  ;;  %v977_v9 = vmax.f32 %v913_v52, 0.0  ;;  %v3807_v46 = vld [vmem:[%s5184_s5 + $0x244] ss:$12 sps:$4 sm:$0xff]  }
 0x140   :  { %v983_v5 = vmax.f32 %v919_v61, 0.0  ;;  %v985_v10 = vmax.f32 %v921_v62, 0.0  ;;  %v3810_v53 = vld [vmem:[%s5185_s7 + $0x4] ss:$12 sps:$4 sm:$0xff]  }
 0x141   :  { %v1014_v36 = vpack.c.bf16 %v982_v42, %v974_v41  ;;  %v4467_v11 = vpack.c.bf16 %v984_v2, %v976_v1  ;;  %v3808_v41 = vld [vmem:[%s5185_s7] ss:$12 sps:$4 sm:$0xff]  }
 0x142   :  { %v1015_v12 = vpack.c.bf16 %v983_v5, %v975_v7  ;;  %v4469_v13 = vpack.c.bf16 %v985_v10, %v977_v9  ;;  %1763 = vmatpush1.bf16.msra.mxu0 %v3790_v63  ;;  %3444 = vmatpush3.bf16.msra.mxu1 %v3794_v39  ;;  %v708_v14 = vpop.f32.mrb[16].mxu0  ;;  %v781_v15 = vpop.f32.mrb[16].mxu1  ;;  %v3813_v7 = vld [vmem:[%s5184_s5 + $0x25c] ss:$12 sps:$4 sm:$0xff]  }
 0x143   :  { %v866_v18 = vadd.f32 %v4438_v50, %v708_v14  ;;  %v868_v19 = vadd.f32 %v4443_v55, %v781_v15  ;;  %v710_v20 = vpop.f32.mrb[17].mxu0  ;;  %v783_v21 = vpop.f32.mrb[17].mxu1  ;;  %1764 = vmatprep.subr.bf16.mxu0 %v3797_v0  ;;  %3445 = vmatprep.subr.bf16.mxu1 %v3798_v3  ;;  %v3805_v0 = vld [vmem:[%s5184_s5 + $0x240] ss:$12 sps:$4 sm:$0xff]  }
 0x144   :  { %v867_v22 = vadd.f32 %v4448_v60, %v710_v20  ;;  %v869_v23 = vadd.f32 %v4459_v40, %v783_v21  ;;  %v712_v24 = vpop.f32.mrb[18].mxu0  ;;  %v785_v25 = vpop.f32.mrb[18].mxu1  ;;  %1741 = vmatprep.mubr.bf16.mxu0 %v1015_v12  ;;  %1881 = vmatprep.mubr.bf16.mxu1 %v1015_v12  ;;  %v3816_v12 = vld [vmem:[%s5185_s7 + $0x1c] ss:$12 sps:$4 sm:$0xff]   ;;  %v3811_v20 = vld [vmem:[%s5184_s5 + $0x258] ss:$12 sps:$4 sm:$0xff]  }
 0x145   :  { %v874_v29 = vadd.f32 %v4438_v50, %v712_v24  ;;  %v876_v31 = vadd.f32 %v4443_v55, %v785_v25  ;;  %v714_v32 = vpop.f32.mrb[19].mxu0  ;;  %v787_v33 = vpop.f32.mrb[19].mxu1  ;;  %1742 = vmatmul.mubr.bf16.gmra.mrb[44].mxu0 %v1014_v36  ;;  %1882 = vmatmul.mubr.bf16.gmra.mrb[44].mxu1 %v1014_v36  ;;  %v930_v47 = vmax.f32 %v866_v18, 0.0  ;;  %v932_v48 = vmax.f32 %v868_v19, 0.0  ;;  %v3814_v21 = vld [vmem:[%s5185_s7 + $0x18] ss:$12 sps:$4 sm:$0xff]  }
 0x146   :  { %v875_v38 = vadd.f32 %v4448_v60, %v714_v32  ;;  %v877_v43 = vadd.f32 %v4459_v40, %v787_v33  ;;  %1765 = vmatpush1.bf16.msra.mxu0 %v3795_v16  ;;  %3446 = vmatpush3.bf16.msra.mxu1 %v3799_v17  ;;  %v931_v54 = vmax.f32 %v867_v22, 0.0  ;;  %v933_v56 = vmax.f32 %v869_v23, 0.0  ;;  %v3819_v22 = vld [vmem:[%s5184_s5 + $0x274] ss:$12 sps:$4 sm:$0xff]  }
 0x147   :  { %v938_v6 = vmax.f32 %v874_v29, 0.0  ;;  %v940_v52 = vmax.f32 %v876_v31, 0.0  ;;  %1784 = vmatprep.mubr.bf16.mxu0 %v4345_v8  ;;  %1922 = vmatprep.mubr.bf16.mxu1 %v4345_v8 }
 0x148   :  { %v939_v57 = vmax.f32 %v875_v38, 0.0  ;;  %v941_v58 = vmax.f32 %v877_v43, 0.0  ;;  %1766 = vmatprep.subr.bf16.mxu0 %v3802_v27  ;;  %3447 = vmatprep.subr.bf16.mxu1 %v3803_v28  ;;  %v3822_v28 = vld [vmem:[%s5185_s7 + $0x34] ss:$12 sps:$4 sm:$0xff]  }
 0x149   :  { %v4505_v59 = vpack.c.bf16 %v938_v6, %v930_v47  ;;  %v4507_v61 = vpack.c.bf16 %v940_v52, %v932_v48  ;;  %v3817_v48 = vld [vmem:[%s5184_s5 + $0x270] ss:$12 sps:$4 sm:$0xff]  }
 0x14a   :  { %v4509_v62 = vpack.c.bf16 %v939_v57, %v931_v54  ;;  %v4511_v63 = vpack.c.bf16 %v941_v58, %v933_v56  ;;  %1767 = vmatpush1.bf16.msra.mxu0 %v3800_v44  ;;  %3448 = vmatpush3.bf16.msra.mxu1 %v3804_v45  ;;  %v718_v8 = vpop.f32.mrb[20].mxu0  ;;  %v791_v39 = vpop.f32.mrb[20].mxu1  ;;  %v3820_v6 = vld [vmem:[%s5185_s7 + $0x30] ss:$12 sps:$4 sm:$0xff]   ;;  %v3825_v57 = vld [vmem:[%s5184_s5 + $0x28c] ss:$12 sps:$4 sm:$0xff]  }
 0x14b   :  { %v882_v1 = vadd.f32 %v4438_v50, %v718_v8  ;;  %v884_v42 = vadd.f32 %v4443_v55, %v791_v39  ;;  %v720_v2 = vpop.f32.mrb[21].mxu0  ;;  %v793_v3 = vpop.f32.mrb[21].mxu1  ;;  %1768 = vmatprep.subr.bf16.mxu0 %v3807_v46  ;;  %2636 = vmatprep.subr.bf16.mxu1 %v3810_v53 }
 0x14c   :  { %v883_v9 = vadd.f32 %v4448_v60, %v720_v2  ;;  %v885_v5 = vadd.f32 %v4459_v40, %v793_v3  ;;  %v722_v10 = vpop.f32.mrb[22].mxu0  ;;  %v795_v36 = vpop.f32.mrb[22].mxu1 }
 0x14d   :  { %v890_v14 = vadd.f32 %v4438_v50, %v722_v10  ;;  %v892_v15 = vadd.f32 %v4443_v55, %v795_v36  ;;  %v724_v16 = vpop.f32.mrb[23].mxu0  ;;  %v797_v17 = vpop.f32.mrb[23].mxu1  ;;  %1923 = vmatmul.mubr.bf16.vlgmr.msra.gmra.mrb[48].mxu1 %v4343_v4  ;;  %v946_v23 = vmax.f32 %v882_v1, 0.0  ;;  %v948_v24 = vmax.f32 %v884_v42, 0.0  ;;  %v3826_v10 = vld [vmem:[%s5185_s7 + $0x48] ss:$12 sps:$4 sm:$0xff]  }
 0x14e   :  { %v891_v18 = vadd.f32 %v4448_v60, %v724_v16  ;;  %v893_v19 = vadd.f32 %v4459_v40, %v797_v17  ;;  %1769 = vmatpush1.bf16.msra.mxu0 %v3805_v0  ;;  %2637 = vmatpush1.bf16.msra.mxu1 %v3808_v41  ;;  %v947_v29 = vmax.f32 %v883_v9, 0.0  ;;  %v949_v31 = vmax.f32 %v885_v5, 0.0  ;;  %v3828_v41 = vld [vmem:[%s5185_s7 + $0x4c] ss:$12 sps:$4 sm:$0xff]   ;;  %v3823_v5 = vld [vmem:[%s5184_s5 + $0x288] ss:$12 sps:$4 sm:$0xff]  }
 0x14f   :  { %v954_v25 = vmax.f32 %v890_v14, 0.0  ;;  %v956_v27 = vmax.f32 %v892_v15, 0.0  ;;  %1930 = vmatprep.mubr.bf16.mxu1 %v4381_v51  ;;  %1770 = vmatprep.subr.bf16.mxu0 %v3813_v7  ;;  %v3831_v36 = vld [vmem:[%s5184_s5 + $0x2a4] ss:$12 sps:$4 sm:$0xff]  }
 0x150   :  { %v955_v32 = vmax.f32 %v891_v18, 0.0  ;;  %v957_v33 = vmax.f32 %v893_v19, 0.0  ;;  %2638 = vmatprep.subr.bf16.mxu1 %v3816_v12  ;;  %v3834_v17 = vld [vmem:[%s5185_s7 + $0x64] ss:$12 sps:$4 sm:$0xff]  }
 0x151   :  { %v4547_v38 = vpack.c.bf16 %v954_v25, %v946_v23  ;;  %v4549_v43 = vpack.c.bf16 %v956_v27, %v948_v24 }
 0x152   :  { %v4551_v44 = vpack.c.bf16 %v955_v32, %v947_v29  ;;  %v4553_v45 = vpack.c.bf16 %v957_v33, %v949_v31  ;;  %1771 = vmatpush1.bf16.msra.mxu0 %v3811_v20  ;;  %2639 = vmatpush1.bf16.msra.mxu1 %v3814_v21  ;;  %v728_v46 = vpop.f32.mrb[24].mxu0  ;;  %v801_v47 = vpop.f32.mrb[24].mxu1  ;;  %v3829_v29 = vld [vmem:[%s5184_s5 + $0x2a0] ss:$12 sps:$4 sm:$0xff]  }
 0x153   :  { %v898_v52 = vadd.f32 %v4438_v50, %v728_v46  ;;  %v900_v53 = vadd.f32 %v4443_v55, %v801_v47  ;;  %v730_v54 = vpop.f32.mrb[25].mxu0  ;;  %v803_v56 = vpop.f32.mrb[25].mxu1  ;;  %1772 = vmatprep.subr.bf16.mxu0 %v3819_v22  ;;  %2640 = vmatprep.subr.bf16.mxu1 %v3822_v28  ;;  %v3832_v31 = vld [vmem:[%s5185_s7 + $0x60] ss:$12 sps:$4 sm:$0xff]  }
 0x154   :  { %v899_v58 = vadd.f32 %v4448_v60, %v730_v54  ;;  %v901_v8 = vadd.f32 %v4459_v40, %v803_v56  ;;  %v732_v39 = vpop.f32.mrb[26].mxu0  ;;  %v805_v0 = vpop.f32.mrb[26].mxu1  ;;  %v3840_v56 = vld [vmem:[%s5185_s7 + $0x7c] ss:$12 sps:$4 sm:$0xff]  }
 0x155   :  { %v906_v1 = vadd.f32 %v4438_v50, %v732_v39  ;;  %v908_v42 = vadd.f32 %v4443_v55, %v805_v0  ;;  %v734_v2 = vpop.f32.mrb[27].mxu0  ;;  %v807_v3 = vpop.f32.mrb[27].mxu1  ;;  %1931 = vmatmul.mubr.bf16.gmra.mrb[52].mxu1 %v4379_v49  ;;  %v962_v12 = vmax.f32 %v898_v52, 0.0  ;;  %v964_v14 = vmax.f32 %v900_v53, 0.0 }
 0x156   :  { %v907_v7 = vadd.f32 %v4448_v60, %v734_v2  ;;  %v909_v9 = vadd.f32 %v4459_v40, %v807_v3  ;;  %1773 = vmatpush1.bf16.msra.mxu0 %v3817_v48  ;;  %2641 = vmatpush1.bf16.msra.mxu1 %v3820_v6  ;;  %v963_v18 = vmax.f32 %v899_v58, 0.0  ;;  %v965_v19 = vmax.f32 %v901_v8, 0.0  ;;  %v3837_v48 = vld [vmem:[%s5184_s5 + $0x2bc] ss:$12 sps:$4 sm:$0xff]  }
 0x157   :  { %v970_v15 = vmax.f32 %v906_v1, 0.0  ;;  %v972_v16 = vmax.f32 %v908_v42, 0.0  ;;  %1938 = vmatprep.mubr.bf16.mxu1 %v4423_v30  ;;  %1774 = vmatprep.subr.bf16.mxu0 %v3825_v57  ;;  %v3835_v1 = vld [vmem:[%s5184_s5 + $0x2b8] ss:$12 sps:$4 sm:$0xff]  }
 0x158   :  { %v971_v20 = vmax.f32 %v907_v7, 0.0  ;;  %v973_v21 = vmax.f32 %v909_v9, 0.0  ;;  %2642 = vmatprep.subr.bf16.mxu1 %v3828_v41 }
 0x159   :  { %v4589_v22 = vpack.c.bf16 %v970_v15, %v962_v12  ;;  %v4591_v23 = vpack.c.bf16 %v972_v16, %v964_v14  ;;  %v3841_v16 = vld [vmem:[%s5184_s5 + $0x2d0] ss:$12 sps:$4 sm:$0xff]  }
 0x15a   :  { %v4593_v24 = vpack.c.bf16 %v971_v20, %v963_v18  ;;  %v4595_v25 = vpack.c.bf16 %v973_v21, %v965_v19  ;;  %1775 = vmatpush1.bf16.msra.mxu0 %v3823_v5  ;;  %2643 = vmatpush1.bf16.msra.mxu1 %v3826_v10  ;;  %v738_v27 = vpop.f32.mrb[28].mxu0  ;;  %v811_v28 = vpop.f32.mrb[28].mxu1  ;;  %v3849_v18 = vld [vmem:[%s5184_s5 + $0x2ec] ss:$12 sps:$4 sm:$0xff]   ;;  %v3847_v20 = vld [vmem:[%s5184_s5 + $0x2e8] ss:$12 sps:$4 sm:$0xff]  }
 0x15b   :  { %v914_v32 = vadd.f32 %v4438_v50, %v738_v27  ;;  %v916_v33 = vadd.f32 %v4443_v55, %v811_v28  ;;  %v740_v46 = vpop.f32.mrb[29].mxu0  ;;  %v813_v47 = vpop.f32.mrb[29].mxu1  ;;  %1776 = vmatprep.subr.bf16.mxu0 %v3831_v36  ;;  %2644 = vmatprep.subr.bf16.mxu1 %v3834_v17  ;;  %v3844_v17 = vld [vmem:[%s5185_s7 + $0x90] ss:$12 sps:$4 sm:$0xff]   ;;  %v3852_v19 = vld [vmem:[%s5185_s7 + $0xac] ss:$12 sps:$4 sm:$0xff]  }
 0x15c   :  { %v915_v6 = vadd.f32 %v4448_v60, %v740_v46  ;;  %v917_v52 = vadd.f32 %v4459_v40, %v813_v47  ;;  %v742_v53 = vpop.f32.mrb[30].mxu0  ;;  %v815_v54 = vpop.f32.mrb[30].mxu1  ;;  %v3850_v21 = vld [vmem:[%s5185_s7 + $0xa8] ss:$12 sps:$4 sm:$0xff]   ;;  %v3855_v27 = vld [vmem:[%s5185_s7 + $0xc4] ss:$12 sps:$4 sm:$0xff]  }
 0x15d   :  { %v922_v57 = vadd.f32 %v4438_v50, %v742_v53  ;;  %v924_v58 = vadd.f32 %v4443_v55, %v815_v54  ;;  %v744_v8 = vpop.f32.mrb[31].mxu0  ;;  %v817_v39 = vpop.f32.mrb[31].mxu1  ;;  %1939 = vmatmul.mubr.bf16.gmra.mrb[56].mxu1 %v4417_v26  ;;  %v3838_v50 = vld [vmem:[%s5185_s7 + $0x78] ss:$12 sps:$4 sm:$0xff]   ;;  %v3843_v55 = vld [vmem:[%s5184_s5 + $0x2d4] ss:$12 sps:$4 sm:$0xff]  }
 0x15e   :  { %v923_v0 = vadd.f32 %v4448_v60, %v744_v8  ;;  %v925_v41 = vadd.f32 %v4459_v40, %v817_v39  ;;  %1777 = vmatpush1.bf16.msra.mxu0 %v3829_v29  ;;  %2645 = vmatpush1.bf16.msra.mxu1 %v3832_v31  ;;  %v978_v42 = vmax.f32 %v914_v32, 0.0  ;;  %v980_v2 = vmax.f32 %v916_v33, 0.0  ;;  %v3846_v40 = vld [vmem:[%s5185_s7 + $0x94] ss:$12 sps:$4 sm:$0xff]   ;;  %v3860_v32 = vld [vmem:[%s5185_s7 + $0xdc] ss:$12 sps:$4 sm:$0xff]  }
 0x15f   :  { %v986_v3 = vmax.f32 %v922_v57, 0.0  ;;  %v988_v60 = vmax.f32 %v924_v58, 0.0  ;;  %1946 = vmatprep.mubr.bf16.mxu1 %v4469_v13  ;;  %1778 = vmatprep.subr.bf16.mxu0 %v3837_v48  ;;  %v979_v7 = vmax.f32 %v915_v6, 0.0  ;;  %v981_v9 = vmax.f32 %v917_v52, 0.0  ;;  %v3856_v28 = vld [vmem:[%s5185_s7 + $0xc8] ss:$12 sps:$4 sm:$0xff]  }
 0x160   :  { %v987_v5 = vmax.f32 %v923_v0, 0.0  ;;  %v989_v10 = vmax.f32 %v925_v41, 0.0  ;;  %2646 = vmatprep.subr.bf16.mxu1 %v3840_v56  ;;  %v3853_v29 = vld [vmem:[%s5185_s7 + $0xc0] ss:$12 sps:$4 sm:$0xff]   ;;  %v3857_v31 = vld [vmem:[%s5185_s7 + $0x8] ss:$12 sps:$4 sm:$0xff]  }
 0x161   :  { %v4631_v36 = vpack.c.bf16 %v986_v3, %v978_v42  ;;  %v4633_v12 = vpack.c.bf16 %v988_v60, %v980_v2  ;;  %v3861_v33 = vld [vmem:[%s5185_s7 + $0xe0] ss:$12 sps:$4 sm:$0xff]   ;;  %v3858_v46 = vld [vmem:[%s5185_s7 + $0xd8] ss:$12 sps:$4 sm:$0xff]   ;;  %v3871_v53 = vld [vmem:[%s5185_s7 + $0x110] ss:$12 sps:$4 sm:$0xff]  }
 0x162   :  { %v4635_v14 = vpack.c.bf16 %v987_v5, %v979_v7  ;;  %v4637_v15 = vpack.c.bf16 %v989_v10, %v981_v9  ;;  %1779 = vmatpush1.bf16.msra.mxu0 %v3835_v1  ;;  %2647 = vmatpush1.bf16.msra.mxu1 %v3838_v50  ;;  %v3862_v47 = vld [vmem:[%s5185_s7 + $0x20] ss:$12 sps:$4 sm:$0xff]   ;;  %v3867_v6 = vld [vmem:[%s5185_s7 + $0x38] ss:$12 sps:$4 sm:$0xff]   ;;  %v3868_v54 = vld [vmem:[%s5185_s7 + $0x108] ss:$12 sps:$4 sm:$0xff]  }
 0x163   :  { %1780 = vmatprep.subr.bf16.mxu0 %v3843_v55  ;;  %2648 = vmatprep.subr.bf16.mxu1 %v3846_v40  ;;  %v3865_v48 = vld [vmem:[%s5185_s7 + $0xf4] ss:$12 sps:$4 sm:$0xff]   ;;  %v3870_v52 = vld [vmem:[%s5185_s7 + $0x10c] ss:$12 sps:$4 sm:$0xff]   ;;  %v3872_v56 = vld [vmem:[%s5185_s7 + $0x50] ss:$12 sps:$4 sm:$0xff]  }
 0x164   :  { %v3875_v57 = vld [vmem:[%s5185_s7 + $0x124] ss:$12 sps:$4 sm:$0xff]   ;;  %v3877_v58 = vld [vmem:[%s5185_s7 + $0x68] ss:$12 sps:$4 sm:$0xff]   ;;  %v3881_v39 = vld [vmem:[%s5185_s7 + $0x140] ss:$12 sps:$4 sm:$0xff]  }
 0x165   :  { %1947 = vmatmul.mubr.bf16.gmra.mrb[60].mxu1 %v4467_v11  ;;  %v3880_v8 = vld [vmem:[%s5185_s7 + $0x13c] ss:$12 sps:$4 sm:$0xff]   ;;  %v3878_v0 = vld [vmem:[%s5185_s7 + $0x138] ss:$12 sps:$4 sm:$0xff]   ;;  %v3882_v41 = vld [vmem:[%s5185_s7 + $0x80] ss:$12 sps:$4 sm:$0xff]  }
 0x166   :  { %1781 = vmatpush1.bf16.msra.mxu0 %v3841_v16  ;;  %2649 = vmatpush1.bf16.msra.mxu1 %v3844_v17  ;;  %v3885_v1 = vld [vmem:[%s5185_s7 + $0x154] ss:$12 sps:$4 sm:$0xff]   ;;  %v3887_v50 = vld [vmem:[%s5185_s7 + $0x98] ss:$12 sps:$4 sm:$0xff]   ;;  %v3891_v42 = vld [vmem:[%s5185_s7 + $0x170] ss:$12 sps:$4 sm:$0xff]  }
 0x167   :  { %2668 = vmatprep.mubr.bf16.mxu1 %v4509_v62  ;;  %1782 = vmatprep.subr.bf16.mxu0 %v3849_v18  ;;  %v3890_v55 = vld [vmem:[%s5185_s7 + $0x16c] ss:$12 sps:$4 sm:$0xff]   ;;  %v3888_v2 = vld [vmem:[%s5185_s7 + $0x168] ss:$12 sps:$4 sm:$0xff]   ;;  %v3892_v3 = vld [vmem:[%s5185_s7 + $0xb0] ss:$12 sps:$4 sm:$0xff]  }
 0x168   :  { %2650 = vmatprep.subr.bf16.mxu1 %v3852_v19  ;;  %v3895_v60 = vld [vmem:[%s5185_s7 + $0x184] ss:$12 sps:$4 sm:$0xff]   ;;  %v3897_v40 = vld [vmem:[%s5185_s7 + $0x188] ss:$12 sps:$4 sm:$0xff]   ;;  %v3901_v9 = vld [vmem:[%s5185_s7 + $0x260] ss:$12 sps:$4 sm:$0xff]  }
 0x169   :  { %v3900_v7 = vld [vmem:[%s5185_s7 + $0x19c] ss:$12 sps:$4 sm:$0xff]   ;;  %v3898_v5 = vld [vmem:[%s5185_s7 + $0x198] ss:$12 sps:$4 sm:$0xff]   ;;  %v3902_v10 = vld [vmem:[%s5185_s7 + $0x1a0] ss:$12 sps:$4 sm:$0xff]  }
 0x16a   :  { %1783 = vmatpush1.bf16.msra.mxu0 %v3847_v20  ;;  %2651 = vmatpush1.bf16.msra.mxu1 %v3850_v21  ;;  %v3905_v16 = vld [vmem:[%s5185_s7 + $0x1b4] ss:$12 sps:$4 sm:$0xff]   ;;  %v3907_v17 = vld [vmem:[%s5185_s7 + $0x1b8] ss:$12 sps:$4 sm:$0xff]   ;;  %v3911_v19 = vld [vmem:[%s5185_s7 + $0x290] ss:$12 sps:$4 sm:$0xff]  }
 0x16b   :  { %2652 = vmatprep.subr.bf16.mxu1 %v3855_v27  ;;  %3473 = vmatprep.subr.bf16.mxu0 %v3856_v28  ;;  %v3910_v18 = vld [vmem:[%s5185_s7 + $0x1cc] ss:$12 sps:$4 sm:$0xff]   ;;  %v3908_v20 = vld [vmem:[%s5185_s7 + $0x1c8] ss:$12 sps:$4 sm:$0xff]   ;;  %v3912_v21 = vld [vmem:[%s5185_s7 + $0x1d0] ss:$12 sps:$4 sm:$0xff]  }
 0x16c   :  { %v3915_v27 = vld [vmem:[%s5185_s7 + $0x1e4] ss:$12 sps:$4 sm:$0xff]   ;;  %v3917_v28 = vld [vmem:[%s5185_s7 + $0x1e8] ss:$12 sps:$4 sm:$0xff]  }
 0x16d   :  { %1785 = vmatmul.mubr.bf16.vlgmr.msra.gmra.mrb[32].mxu0 %v4343_v4  ;;  %v3866_v4 = vld [vmem:[%s5185_s7 + $0xf8] ss:$12 sps:$4 sm:$0xff]  }
 0x16e   :  { %1794 = vmatprep.mubr.bf16.mxu0 %v4381_v51  ;;  %2653 = vmatpush1.bf16.msra.mxu1 %v3853_v29  ;;  %v3863_v51 = vld [vmem:[%s5185_s7 + $0xf0] ss:$12 sps:$4 sm:$0xff]  }
 0x16f   :  { %3474 = vmatpush3.bf16.msra.mxu0 %v3857_v31  ;;  %2654 = vmatprep.subr.bf16.mxu1 %v3860_v32  ;;  %v3920_v29 = vld [vmem:[%s5185_s7 + $0x1fc] ss:$12 sps:$4 sm:$0xff]   ;;  %v3921_v31 = vld [vmem:[%s5185_s7 + $0x2c0] ss:$12 sps:$4 sm:$0xff]   ;;  %v3918_v32 = vld [vmem:[%s5185_s7 + $0x1f8] ss:$12 sps:$4 sm:$0xff]  }
 0x170   :  { %3475 = vmatprep.subr.bf16.mxu0 %v3861_v33  ;;  %v3922_v33 = vld [vmem:[%s5185_s7 + $0x200] ss:$12 sps:$4 sm:$0xff]  }
 0x172   :  { %2655 = vmatpush1.bf16.msra.mxu1 %v3858_v46  ;;  %v3925_v46 = vld [vmem:[%s5185_s7 + $0x214] ss:$12 sps:$4 sm:$0xff]  }
 0x173   :  { %3476 = vmatpush3.bf16.msra.mxu0 %v3862_v47  ;;  %2656 = vmatprep.subr.bf16.mxu1 %v3865_v48  ;;  %v3927_v47 = vld [vmem:[%s5185_s7 + $0x218] ss:$12 sps:$4 sm:$0xff]  }
 0x174   :  { %3477 = vmatprep.subr.bf16.mxu0 %v3866_v4  ;;  %v3930_v48 = vld [vmem:[%s5185_s7 + $0x22c] ss:$12 sps:$4 sm:$0xff]   ;;  %v3931_v4 = vld [vmem:[%s5185_s7 + $0x2f0] ss:$12 sps:$4 sm:$0xff]  }
 0x175   :  { %1795 = vmatmul.mubr.bf16.gmra.mrb[36].mxu0 %v4379_v49  ;;  %v3876_v49 = vld [vmem:[%s5185_s7 + $0x128] ss:$12 sps:$4 sm:$0xff]  }
 0x176   :  { %1804 = vmatprep.mubr.bf16.mxu0 %v4423_v30  ;;  %2657 = vmatpush1.bf16.msra.mxu1 %v3863_v51  ;;  %v3873_v30 = vld [vmem:[%s5185_s7 + $0x120] ss:$12 sps:$4 sm:$0xff]   ;;  %v3928_v51 = vld [vmem:[%s5185_s7 + $0x228] ss:$12 sps:$4 sm:$0xff]  }
 0x177   :  { %3478 = vmatpush3.bf16.msra.mxu0 %v3867_v6  ;;  %2658 = vmatprep.subr.bf16.mxu1 %v3870_v52  ;;  %v3932_v6 = vld [vmem:[%s5185_s7 + $0x230] ss:$12 sps:$4 sm:$0xff]  }
 0x178   :  { %3479 = vmatprep.subr.bf16.mxu0 %v3871_v53  ;;  %v3935_v52 = vld [vmem:[%s5185_s7 + $0x244] ss:$12 sps:$4 sm:$0xff]  }
 0x179   :  { %v3936_v53 = vld [vmem:[%s5185_s7 + $0x258] ss:$12 sps:$4 sm:$0xff]  }
 0x17a   :  { %2659 = vmatpush1.bf16.msra.mxu1 %v3868_v54  ;;  %v3941_v54 = vld [vmem:[%s5185_s7 + $0x274] ss:$12 sps:$4 sm:$0xff]  }
 0x17b   :  { %3480 = vmatpush3.bf16.msra.mxu0 %v3872_v56  ;;  %2660 = vmatprep.subr.bf16.mxu1 %v3875_v57  ;;  %v3939_v56 = vld [vmem:[%s5185_s7 + $0x270] ss:$12 sps:$4 sm:$0xff]   ;;  %v3944_v57 = vld [vmem:[%s5185_s7 + $0x28c] ss:$12 sps:$4 sm:$0xff]  }
 0x17c   :  { %3481 = vmatprep.subr.bf16.mxu0 %v3876_v49  ;;  %v3942_v49 = vld [vmem:[%s5185_s7 + $0x288] ss:$12 sps:$4 sm:$0xff]  }
 0x17d   :  { %1805 = vmatmul.mubr.bf16.gmra.mrb[40].mxu0 %v4417_v26  ;;  %v3886_v26 = vld [vmem:[%s5185_s7 + $0x158] ss:$12 sps:$4 sm:$0xff]  }
 0x17e   :  { %1814 = vmatprep.mubr.bf16.mxu0 %v4469_v13  ;;  %2661 = vmatpush1.bf16.msra.mxu1 %v3873_v30  ;;  %v3883_v13 = vld [vmem:[%s5185_s7 + $0x150] ss:$12 sps:$4 sm:$0xff]  }
 0x17f   :  { %3482 = vmatpush3.bf16.msra.mxu0 %v3877_v58  ;;  %2662 = vmatprep.subr.bf16.mxu1 %v3880_v8  ;;  %v3947_v30 = vld [vmem:[%s5185_s7 + $0x2a4] ss:$12 sps:$4 sm:$0xff]   ;;  %v3945_v58 = vld [vmem:[%s5185_s7 + $0x2a0] ss:$12 sps:$4 sm:$0xff]   ;;  %v3950_v8 = vld [vmem:[%s5185_s7 + $0x2bc] ss:$12 sps:$4 sm:$0xff]  }
 0x180   :  { %3483 = vmatprep.subr.bf16.mxu0 %v3881_v39  ;;  %v3948_v39 = vld [vmem:[%s5185_s7 + $0x2b8] ss:$12 sps:$4 sm:$0xff]  }
 0x182   :  { %2663 = vmatpush1.bf16.msra.mxu1 %v3878_v0  ;;  %v3953_v0 = vld [vmem:[%s5185_s7 + $0x2d4] ss:$12 sps:$4 sm:$0xff]  }
 0x183   :  { %3484 = vmatpush3.bf16.msra.mxu0 %v3882_v41  ;;  %2664 = vmatprep.subr.bf16.mxu1 %v3885_v1  ;;  %v3951_v41 = vld [vmem:[%s5185_s7 + $0x2d0] ss:$12 sps:$4 sm:$0xff]   ;;  %v3956_v1 = vld [vmem:[%s5185_s7 + $0x2ec] ss:$12 sps:$4 sm:$0xff]  }
 0x184   :  { %3485 = vmatprep.subr.bf16.mxu0 %v3886_v26  ;;  %v3954_v26 = vld [vmem:[%s5185_s7 + $0x2e8] ss:$12 sps:$4 sm:$0xff]  }
 0x185   :  { %1815 = vmatmul.mubr.bf16.gmra.mrb[44].mxu0 %v4467_v11  ;;  %v3896_v11 = vld [vmem:[%s5185_s7 + $0x248] ss:$12 sps:$4 sm:$0xff]  }
 0x186   :  { %2665 = vmatpush1.bf16.msra.mxu1 %v3883_v13  ;;  %2814 = vmatprep.mubr.bf16.mxu0 %v4509_v62  ;;  %v3893_v62 = vld [vmem:[%s5185_s7 + $0x180] ss:$12 sps:$4 sm:$0xff]  }
 0x187   :  { %3486 = vmatpush3.bf16.msra.mxu0 %v3887_v50  ;;  %2666 = vmatprep.subr.bf16.mxu1 %v3890_v55 }
 0x188   :  { %3487 = vmatprep.subr.bf16.mxu0 %v3891_v42 }
 0x18a   :  { %2667 = vmatpush1.bf16.msra.mxu1 %v3888_v2 }
 0x18b   :  { %3488 = vmatpush3.bf16.msra.mxu0 %v3892_v3  ;;  %2709 = vmatprep.subr.bf16.mxu1 %v3895_v60 }
 0x18c   :  { %3513 = vmatprep.subr.bf16.mxu0 %v3896_v11 }
 0x18d   :  { %2669 = vmatmul.mubr.bf16.vlgmr.msra.gmra.mrb[64].mxu1 %v4505_v59 }
 0x18e   :  { %2815 = vmatmul.mubr.bf16.vlgmr.msra.gmra.mrb[48].mxu0 %v4505_v59  ;;  %2678 = vmatprep.mubr.bf16.mxu1 %v4551_v44  ;;  %v3906_v59 = vld [vmem:[%s5185_s7 + $0x278] ss:$12 sps:$4 sm:$0xff]  }
 0x18f   :  { %2710 = vmatpush1.bf16.msra.mxu1 %v3893_v62  ;;  %2822 = vmatprep.mubr.bf16.mxu0 %v4551_v44  ;;  %v3903_v44 = vld [vmem:[%s5185_s7 + $0x1b0] ss:$12 sps:$4 sm:$0xff]  }
 0x190   :  { %3514 = vmatpush3.bf16.msra.mxu0 %v3897_v40  ;;  %2711 = vmatprep.subr.bf16.mxu1 %v3900_v7 }
 0x191   :  { %3515 = vmatprep.subr.bf16.mxu0 %v3901_v9 }
 0x193   :  { %2712 = vmatpush1.bf16.msra.mxu1 %v3898_v5 }
 0x194   :  { %3516 = vmatpush3.bf16.msra.mxu0 %v3902_v10  ;;  %2713 = vmatprep.subr.bf16.mxu1 %v3905_v16 }
 0x195   :  { %2679 = vmatmul.mubr.bf16.gmra.mrb[68].mxu1 %v4547_v38  ;;  %3517 = vmatprep.subr.bf16.mxu0 %v3906_v59  ;;  %v1150_v59 = vld [vmem:[%s5187_s6] sm:$0x7] }
 0x196   :  { %2823 = vmatmul.mubr.bf16.gmra.mrb[52].mxu0 %v4547_v38  ;;  %2688 = vmatprep.mubr.bf16.mxu1 %v4593_v24  ;;  %v3916_v38 = vld [vmem:[%s5185_s7 + $0x2a8] ss:$12 sps:$4 sm:$0xff]  }
 0x197   :  { %2714 = vmatpush1.bf16.msra.mxu1 %v3903_v44  ;;  %2830 = vmatprep.mubr.bf16.mxu0 %v4593_v24  ;;  %v3913_v24 = vld [vmem:[%s5185_s7 + $0x1e0] ss:$12 sps:$4 sm:$0xff]  }
 0x198   :  { %3518 = vmatpush3.bf16.msra.mxu0 %v3907_v17  ;;  %2715 = vmatprep.subr.bf16.mxu1 %v3910_v18  ;;  %v1163_v18 = vrot.slane %v1150_v59, %v4309_v35 }
 0x199   :  { %3519 = vmatprep.subr.bf16.mxu0 %v3911_v19 }
 0x19b   :  { %2716 = vmatpush1.bf16.msra.mxu1 %v3908_v20 }
 0x19c   :  { %3520 = vmatpush3.bf16.msra.mxu0 %v3912_v21  ;;  %2717 = vmatprep.subr.bf16.mxu1 %v3915_v27 }
 0x19d   :  { %2689 = vmatmul.mubr.bf16.gmra.mrb[72].mxu1 %v4589_v22  ;;  %3521 = vmatprep.subr.bf16.mxu0 %v3916_v38 }
 0x19e   :  { %2831 = vmatmul.mubr.bf16.gmra.mrb[56].mxu0 %v4589_v22  ;;  %2698 = vmatprep.mubr.bf16.mxu1 %v4635_v14  ;;  %v3926_v22 = vld [vmem:[%s5185_s7 + $0x2d8] ss:$12 sps:$4 sm:$0xff]  }
 0x19f   :  { %2718 = vmatpush1.bf16.msra.mxu1 %v3913_v24  ;;  %2838 = vmatprep.mubr.bf16.mxu0 %v4635_v14  ;;  %v3923_v14 = vld [vmem:[%s5185_s7 + $0x210] ss:$12 sps:$4 sm:$0xff]  }
 0x1a0   :  { %3522 = vmatpush3.bf16.msra.mxu0 %v3917_v28  ;;  %2719 = vmatprep.subr.bf16.mxu1 %v3920_v29 }
 0x1a1   :  { %3523 = vmatprep.subr.bf16.mxu0 %v3921_v31 }
 0x1a3   :  { %2720 = vmatpush1.bf16.msra.mxu1 %v3918_v32 }
 0x1a4   :  { %3524 = vmatpush3.bf16.msra.mxu0 %v3922_v33  ;;  %2721 = vmatprep.subr.bf16.mxu1 %v3925_v46 }
 0x1a5   :  { %2699 = vmatmul.mubr.bf16.gmra.mrb[76].mxu1 %v4631_v36  ;;  %3525 = vmatprep.subr.bf16.mxu0 %v3926_v22 }
 0x1a6   :  { %2839 = vmatmul.mubr.bf16.gmra.mrb[60].mxu0 %v4631_v36  ;;  %2741 = vmatprep.mubr.bf16.mxu1 %v4511_v63  ;;  %v3938_v36 = vld [vmem:[%s5185_s7 + $0x25c] ss:$12 sps:$4 sm:$0xff]  }
 0x1a7   :  { %2722 = vmatpush1.bf16.msra.mxu1 %v3923_v14  ;;  %2879 = vmatprep.mubr.bf16.mxu0 %v4511_v63  ;;  %v3933_v63 = vld [vmem:[%s5185_s7 + $0x240] ss:$12 sps:$4 sm:$0xff]  }
 0x1a8   :  { %3526 = vmatpush3.bf16.msra.mxu0 %v3927_v47  ;;  %2723 = vmatprep.subr.bf16.mxu1 %v3930_v48 }
 0x1a9   :  { %3527 = vmatprep.subr.bf16.mxu0 %v3931_v4 }
 0x1ab   :  { %2724 = vmatpush1.bf16.msra.mxu1 %v3928_v51 }
 0x1ac   :  { %3528 = vmatpush3.bf16.msra.mxu0 %v3932_v6  ;;  %2725 = vmatprep.subr.bf16.mxu1 %v3935_v52 }
 0x1af   :  { %2880 = vmatmul.mubr.bf16.vlgmr.msra.gmra.mrb[64].mxu0 %v4507_v61  ;;  %2726 = vmatpush1.bf16.msra.mxu1 %v3933_v63 }
 0x1b0   :  { %2887 = vmatprep.mubr.bf16.mxu0 %v4553_v45  ;;  %2727 = vmatprep.subr.bf16.mxu1 %v3938_v36 }
 0x1b3   :  { %2728 = vmatpush1.bf16.msra.mxu1 %v3936_v53 }
 0x1b4   :  { %2729 = vmatprep.subr.bf16.mxu1 %v3941_v54 }
 0x1b7   :  { %2888 = vmatmul.mubr.bf16.gmra.mrb[68].mxu0 %v4549_v43  ;;  %2730 = vmatpush1.bf16.msra.mxu1 %v3939_v56 }
 0x1b8   :  { %2895 = vmatprep.mubr.bf16.mxu0 %v4595_v25  ;;  %2731 = vmatprep.subr.bf16.mxu1 %v3944_v57 }
 0x1bb   :  { %2732 = vmatpush1.bf16.msra.mxu1 %v3942_v49 }
 0x1bc   :  { %2733 = vmatprep.subr.bf16.mxu1 %v3947_v30 }
 0x1bf   :  { %2896 = vmatmul.mubr.bf16.gmra.mrb[72].mxu0 %v4591_v23  ;;  %2734 = vmatpush1.bf16.msra.mxu1 %v3945_v58 }
 0x1c0   :  { %2903 = vmatprep.mubr.bf16.mxu0 %v4637_v15  ;;  %2735 = vmatprep.subr.bf16.mxu1 %v3950_v8 }
 0x1c3   :  { %2736 = vmatpush1.bf16.msra.mxu1 %v3948_v39 }
 0x1c4   :  { %2737 = vmatprep.subr.bf16.mxu1 %v3953_v0 }
 0x1c7   :  { %2904 = vmatmul.mubr.bf16.gmra.mrb[76].mxu0 %v4633_v12  ;;  %2738 = vmatpush1.bf16.msra.mxu1 %v3951_v41 }
 0x1c8   :  { %2739 = vmatprep.subr.bf16.mxu1 %v3956_v1 }
 0x1cb   :  { %2740 = vmatpush1.bf16.msra.mxu1 %v3954_v26 }
 0x1ce   :  { %2742 = vmatmul.mubr.bf16.vlgmr.msra.gmra.mrb[64].mxu1 %v4507_v61 }
 0x1cf   :  { %2751 = vmatprep.mubr.bf16.mxu1 %v4553_v45 }
 0x1d6   :  { %2752 = vmatmul.mubr.bf16.gmra.mrb[68].mxu1 %v4549_v43 }
 0x1d7   :  { %2761 = vmatprep.mubr.bf16.mxu1 %v4595_v25 }
 0x1de   :  { %2762 = vmatmul.mubr.bf16.gmra.mrb[72].mxu1 %v4591_v23 }
 0x1df   :  { %2771 = vmatprep.mubr.bf16.mxu1 %v4637_v15 }
 0x1e6   :  { %2772 = vmatmul.mubr.bf16.gmra.mrb[76].mxu1 %v4633_v12 }
 0x200   :  { %v3409_v13 = vpop.f32.mrb[32].mxu1 }
 0x201   :  { %v3410_v50 = vpop.f32.mrb[33].mxu1 }
 0x202   :  { %v3411_v55 = vadd.f32 %v3410_v50, %v3409_v13  ;;  %v3412_v42 = vpop.f32.mrb[34].mxu1 }
 0x203   :  { %v3413_v2 = vpop.f32.mrb[35].mxu1 }
 0x204   :  { %v3414_v3 = vadd.f32 %v3413_v2, %v3412_v42  ;;  %v1860_v21 = vadd.f32 %v3411_v55, %v1163_v18  ;;  %v4952_v2 = vrot.slane %v1150_v59, %v4306_v34 }
 0x206   :  { %v1863_v28 = vadd.f32 %v3414_v3, %v1163_v18 }
 0x208   :  { %v3415_v60 = vpop.f32.mrb[36].mxu1 }
 0x209   :  { %v3416_v61 = vpop.f32.mrb[37].mxu1 }
 0x20a   :  { %v3417_v11 = vadd.f32 %v3416_v61, %v3415_v60  ;;  %v3418_v45 = vpop.f32.mrb[38].mxu1  ;;  %v2936_v60 = vld [vmem:[%s5188_s9] sm:$0x7]  ;;  %v4960_v61 = vrot.slane %v1150_v59, %v4317_v37 }
 0x20b   :  { %v3419_v62 = vpop.f32.mrb[39].mxu1 }
 0x20c   :  { %v3420_v43 = vadd.f32 %v3419_v62, %v3418_v45  ;;  %v1868_v22 = vadd.f32 %v3417_v11, %v1163_v18 }
 0x20e   :  { %v1871_v4 = vadd.f32 %v3420_v43, %v1163_v18  ;;  %v4964_v43 = vrot.slane %v2936_v60, %v4306_v34 }
 0x210   :  { %v3421_v40 = vpop.f32.mrb[40].mxu1 }
 0x211   :  { %v3422_v25 = vpop.f32.mrb[41].mxu1 }
 0x212   :  { %v3423_v7 = vadd.f32 %v3422_v25, %v3421_v40  ;;  %v3424_v23 = vpop.f32.mrb[42].mxu1  ;;  %v4967_v25 = vrot.slane %v2936_v60, %v4309_v35 }
 0x213   :  { %v3425_v9 = vpop.f32.mrb[43].mxu1 }
 0x214   :  { %v3426_v15 = vadd.f32 %v3425_v9, %v3424_v23  ;;  %v1876_v53 = vadd.f32 %v3423_v7, %v1163_v18  ;;  %v4971_v23 = vrot.slane %v2936_v60, %v4317_v37 }
 0x216   :  { %v1879_v49 = vadd.f32 %v3426_v15, %v1163_v18 }
 0x218   :  { %v3427_v5 = vpop.f32.mrb[44].mxu1 }
 0x219   :  { %v3428_v12 = vpop.f32.mrb[45].mxu1 }
 0x21a   :  { %v3429_v10 = vadd.f32 %v3428_v12, %v3427_v5  ;;  %v3430_v16 = vpop.f32.mrb[46].mxu1 }
 0x21b   :  { %v3431_v44 = vpop.f32.mrb[47].mxu1 }
 0x21c   :  { %v3432_v17 = vadd.f32 %v3431_v44, %v3430_v16  ;;  %v1884_v41 = vadd.f32 %v3429_v10, %v1163_v18 }
 0x21e   :  { %v1887_v50 = vadd.f32 %v3432_v17, %v1163_v18 }
 0x220   :  { %v3449_v19 = vpop.f32.mrb[48].mxu1 }
 0x221   :  { %v3450_v20 = vpop.f32.mrb[49].mxu1 }
 0x222   :  { %v3451_v27 = vadd.f32 %v3450_v20, %v3449_v19  ;;  %v3452_v38 = vpop.f32.mrb[50].mxu1 }
 0x223   :  { %v3453_v24 = vpop.f32.mrb[51].mxu1 }
 0x224   :  { %v1925_v29 = vadd.f32 %v3451_v27, %v1860_v21  ;;  %v3454_v31 = vadd.f32 %v3453_v24, %v3452_v38 }
 0x226   :  { %v1928_v32 = vadd.f32 %v3454_v31, %v1863_v28  ;;  %v1957_v45 = vmax.f32 %v1925_v29, 0.0 }
 0x228   :  { %v3455_v33 = vpop.f32.mrb[52].mxu1  ;;  %v1960_v15 = vmax.f32 %v1928_v32, 0.0  ;;  %v2955_v18 = vmul.f32 %v4967_v25, %v1957_v45 }
 0x229   :  { %v3456_v46 = vpop.f32.mrb[53].mxu1 }
 0x22a   :  { %v3457_v14 = vadd.f32 %v3456_v46, %v3455_v33  ;;  %v3458_v47 = vpop.f32.mrb[54].mxu1  ;;  %v2958_v27 = vmul.f32 %v4967_v25, %v1960_v15  ;;  %v2979_v33 = vsel %vm2978_vm4, %v2955_v18, 0.0 }
 0x22b   :  { %v3459_v48 = vpop.f32.mrb[55].mxu1 }
 0x22c   :  { %v4941_v51 = vadd.f32 %v3457_v14, %v1868_v22  ;;  %v3460_v6 = vadd.f32 %v3459_v48, %v3458_v47 }
 0x22e   :  { %v4943_v52 = vadd.f32 %v3460_v6, %v1871_v4  ;;  %v1963_v29 = vmax.f32 %v4941_v51, 0.0 }
 0x230   :  { %v3461_v63 = vpop.f32.mrb[56].mxu1  ;;  %v1966_v48 = vmax.f32 %v4943_v52, 0.0 }
 0x231   :  { %v3462_v36 = vpop.f32.mrb[57].mxu1 }
 0x232   :  { %v3463_v54 = vadd.f32 %v3462_v36, %v3461_v63  ;;  %v3464_v56 = vpop.f32.mrb[58].mxu1  ;;  %v2984_v36 = vsel %vm2978_vm4, %v2958_v27, 0.0 }
 0x233   :  { %v3465_v57 = vpop.f32.mrb[59].mxu1 }
 0x234   :  { %v4945_v30 = vadd.f32 %v3463_v54, %v1876_v53  ;;  %v3466_v58 = vadd.f32 %v3465_v57, %v3464_v56 }
 0x236   :  { %v4947_v8 = vadd.f32 %v3466_v58, %v1879_v49  ;;  %v2961_v49 = vmul.f32 %v4967_v25, %v1963_v29 }
 0x238   :  { %v3467_v39 = vpop.f32.mrb[60].mxu1  ;;  %v2989_v60 = vsel %vm2978_vm4, %v2961_v49, 0.0 }
 0x239   :  { %v3468_v0 = vpop.f32.mrb[61].mxu1 }
 0x23a   :  { %v3469_v1 = vadd.f32 %v3468_v0, %v3467_v39  ;;  %v3470_v26 = vpop.f32.mrb[62].mxu1  ;;  %v2964_v0 = vmul.f32 %v4967_v25, %v1966_v48 }
 0x23b   :  { %v3471_v13 = vpop.f32.mrb[63].mxu1 }
 0x23c   :  { %v4949_v55 = vadd.f32 %v3469_v1, %v1884_v41  ;;  %v3472_v42 = vadd.f32 %v3471_v13, %v3470_v26  ;;  %v1969_v13 = vmax.f32 %v4945_v30, 0.0 }
 0x23e   :  { %v4954_v3 = vadd.f32 %v3472_v42, %v1887_v50 }
 0x240   :  { %v1786_v11 = vpop.f32.mrb[32].mxu0 }
 0x241   :  { %v3553_v62 = vadd.f32 %v1786_v11, %v4952_v2  ;;  %v1788_v40 = vpop.f32.mrb[33].mxu0 }
 0x242   :  { %v3554_v7 = vadd.f32 %v1788_v40, %v4960_v61  ;;  %v1790_v9 = vpop.f32.mrb[34].mxu0 }
 0x243   :  { %v1955_v5 = vmax.f32 %v3553_v62, 0.0  ;;  %v3555_v12 = vadd.f32 %v1790_v9, %v4952_v2  ;;  %v1792_v10 = vpop.f32.mrb[35].mxu0 }
 0x244   :  { %v1956_v16 = vmax.f32 %v3554_v7, 0.0  ;;  %v3556_v59 = vadd.f32 %v1792_v10, %v4960_v61  ;;  %v1972_v7 = vmax.f32 %v4947_v8, 0.0 }
 0x245   :  { %v2953_v44 = vmul.f32 %v4964_v43, %v1955_v5  ;;  %v1958_v17 = vmax.f32 %v3555_v12, 0.0  ;;  %v2994_v12 = vsel %vm2978_vm4, %v2964_v0, 0.0 }
 0x246   :  { %v2954_v19 = vmul.f32 %v4971_v23, %v1956_v16  ;;  %v1959_v20 = vmax.f32 %v3556_v59, 0.0 }
 0x247   :  { %v2956_v21 = vmul.f32 %v4964_v43, %v1958_v17  ;;  %v2967_v17 = vmul.f32 %v4967_v25, %v1969_v13 }
 0x248   :  { %v2957_v38 = vmul.f32 %v4971_v23, %v1959_v20  ;;  %v1796_v24 = vpop.f32.mrb[36].mxu0  ;;  %v2977_v28 = vadd.f32 %v2954_v19, %v2953_v44  ;;  %v2970_v20 = vmul.f32 %v4967_v25, %v1972_v7 }
 0x249   :  { %v3557_v31 = vadd.f32 %v1796_v24, %v4952_v2  ;;  %v1798_v32 = vpop.f32.mrb[37].mxu0  ;;  %v1975_v24 = vmax.f32 %v4949_v55, 0.0 }
 0x24a   :  { %v3558_v46 = vadd.f32 %v1798_v32, %v4960_v61  ;;  %v1800_v22 = vpop.f32.mrb[38].mxu0  ;;  %v2980_v14 = vadd.f32 %v2979_v33, %v2977_v28  ;;  %v2983_v47 = vadd.f32 %v2957_v38, %v2956_v21 }
 0x24b   :  { %v1961_v4 = vmax.f32 %v3557_v31, 0.0  ;;  %v3559_v6 = vadd.f32 %v1800_v22, %v4952_v2  ;;  %v1802_v63 = vpop.f32.mrb[39].mxu0  ;;  %v2999_v31 = vsel %vm2978_vm4, %v2967_v17, 0.0  ;;  %v2107_v17 = vld [vmem:[%s5189_s8] sm:$0x7] }
 0x24c   :  { %v1962_v53 = vmax.f32 %v3558_v46, 0.0  ;;  %v3560_v51 = vadd.f32 %v1802_v63, %v4960_v61  ;;  %2981 = vadd.xlane.f32.xlu0 %v2980_v14  ;;  %v2985_v54 = vadd.f32 %v2984_v36, %v2983_v47  ;;  %v1978_v14 = vmax.f32 %v4954_v3, 0.0 }
 0x24d   :  { %v2959_v56 = vmul.f32 %v4964_v43, %v1961_v4  ;;  %v1964_v57 = vmax.f32 %v3559_v6, 0.0  ;;  %v3004_v6 = vsel %vm2978_vm4, %v2970_v20, 0.0 }
 0x24e   :  { %v2960_v58 = vmul.f32 %v4971_v23, %v1962_v53  ;;  %v1965_v39 = vmax.f32 %v3560_v51, 0.0 }
 0x24f   :  { %v2962_v52 = vmul.f32 %v4964_v43, %v1964_v57 }
 0x250   :  { %v2963_v41 = vmul.f32 %v4971_v23, %v1965_v39  ;;  %v1806_v1 = vpop.f32.mrb[40].mxu0  ;;  %2986 = vadd.xlane.f32.xlu0 %v2985_v54  ;;  %v2988_v26 = vadd.f32 %v2960_v58, %v2959_v56  ;;  %v2973_v54 = vmul.f32 %v4967_v25, %v1975_v24 }
 0x251   :  { %v3561_v50 = vadd.f32 %v1806_v1, %v4952_v2  ;;  %v1808_v42 = vpop.f32.mrb[41].mxu0 }
 0x252   :  { %v3562_v11 = vadd.f32 %v1808_v42, %v4960_v61  ;;  %v1810_v45 = vpop.f32.mrb[42].mxu0  ;;  %v2990_v62 = vadd.f32 %v2989_v60, %v2988_v26  ;;  %v2993_v40 = vadd.f32 %v2963_v41, %v2962_v52 }
 0x253   :  { %v1967_v9 = vmax.f32 %v3561_v50, 0.0  ;;  %v3563_v15 = vadd.f32 %v1810_v45, %v4952_v2  ;;  %v1812_v5 = vpop.f32.mrb[43].mxu0 }
 0x254   :  { %v1968_v10 = vmax.f32 %v3562_v11, 0.0  ;;  %v3564_v30 = vadd.f32 %v1812_v5, %v4960_v61  ;;  %2991 = vadd.xlane.f32.xlu1 %v2990_v62  ;;  %v2995_v16 = vadd.f32 %v2994_v12, %v2993_v40 }
 0x255   :  { %v2965_v59 = vmul.f32 %v4964_v43, %v1967_v9  ;;  %v1970_v44 = vmax.f32 %v3563_v15, 0.0 }
 0x256   :  { %v2966_v18 = vmul.f32 %v4971_v23, %v1968_v10  ;;  %v1971_v19 = vmax.f32 %v3564_v30, 0.0 }
 0x257   :  { %v2968_v8 = vmul.f32 %v4964_v43, %v1970_v44 }
 0x258   :  { %v2969_v21 = vmul.f32 %v4971_v23, %v1971_v19  ;;  %v1816_v27 = vpop.f32.mrb[44].mxu0  ;;  %2996 = vadd.xlane.f32.xlu1 %v2995_v16  ;;  %v2998_v38 = vadd.f32 %v2966_v18, %v2965_v59  ;;  %v2120_v19 = vrot.slane %v2107_v17, %v4309_v35 }
 0x259   :  { %v3565_v28 = vadd.f32 %v1816_v27, %v4952_v2  ;;  %v1818_v29 = vpop.f32.mrb[45].mxu0 }
 0x25a   :  { %v3566_v32 = vadd.f32 %v1818_v29, %v4960_v61  ;;  %v1820_v33 = vpop.f32.mrb[46].mxu0  ;;  %v3000_v46 = vadd.f32 %v2999_v31, %v2998_v38  ;;  %v3003_v22 = vadd.f32 %v2969_v21, %v2968_v8 }
 0x25b   :  { %v1973_v47 = vmax.f32 %v3565_v28, 0.0  ;;  %v3567_v48 = vadd.f32 %v1820_v33, %v4952_v2  ;;  %v1822_v4 = vpop.f32.mrb[47].mxu0  ;;  %v2976_v2 = vmul.f32 %v4967_v25, %v1978_v14 }
 0x25c   :  { %v1974_v63 = vmax.f32 %v3566_v32, 0.0  ;;  %v3568_v55 = vadd.f32 %v1822_v4, %v4960_v61  ;;  %3001 = vadd.xlane.f32.xlu0 %v3000_v46  ;;  %v3005_v36 = vadd.f32 %v3004_v6, %v3003_v22  ;;  %v3009_v61 = vsel %vm2978_vm4, %v2973_v54, 0.0 }
 0x25d   :  { %v2971_v53 = vmul.f32 %v4964_v43, %v1973_v47  ;;  %v1976_v51 = vmax.f32 %v3567_v48, 0.0  ;;  %v3014_v13 = vsel %vm2978_vm4, %v2976_v2, 0.0 }
 0x25e   :  { %v2972_v56 = vmul.f32 %v4971_v23, %v1974_v63  ;;  %v1977_v57 = vmax.f32 %v3568_v55, 0.0  ;;  %3006 = vadd.xlane.f32.xlu1 %v3005_v36 }
 0x25f   :  { %v2974_v3 = vmul.f32 %v4964_v43, %v1976_v51 }
 0x260   :  { %v2975_v49 = vmul.f32 %v4971_v23, %v1977_v57  ;;  %v3008_v58 = vadd.f32 %v2972_v56, %v2971_v53 }
 0x261   :  { %v3489_v39 = vpop.f32.mrb[48].mxu0 }
 0x262   :  { %v3490_v52 = vpop.f32.mrb[49].mxu0  ;;  %v3010_v0 = vadd.f32 %v3009_v61, %v3008_v58  ;;  %v3013_v41 = vadd.f32 %v2975_v49, %v2974_v3 }
 0x263   :  { %v3491_v1 = vadd.f32 %v3490_v52, %v3489_v39  ;;  %v3492_v26 = vpop.f32.mrb[50].mxu0 }
 0x264   :  { %v3493_v50 = vpop.f32.mrb[51].mxu0  ;;  %3011 = vadd.xlane.f32.xlu0 %v3010_v0  ;;  %v3015_v42 = vadd.f32 %v3014_v13, %v3013_v41 }
 0x265   :  { %v3494_v60 = vadd.f32 %v3493_v50, %v3492_v26  ;;  %v2817_v21 = vadd.f32 %v3491_v1, %v2120_v19 }
 0x266   :  { %3016 = vadd.xlane.f32.xlu1 %v3015_v42  ;;  %v5040_v42 = vrot.slane %v2107_v17, %v4306_v34 }
 0x267   :  { %v2820_v28 = vadd.f32 %v3494_v60, %v2120_v19  ;;  %v3033_v60 = vld [vmem:[%s5190_s10] sm:$0x7] }
 0x269   :  { %v3495_v43 = vpop.f32.mrb[52].mxu0 }
 0x26a   :  { %v3496_v25 = vpop.f32.mrb[53].mxu0 }
 0x26b   :  { %v3497_v11 = vadd.f32 %v3496_v25, %v3495_v43  ;;  %v3498_v23 = vpop.f32.mrb[54].mxu0  ;;  %v5046_v43 = vrot.slane %v2107_v17, %v4317_v37 }
 0x26c   :  { %v3499_v45 = vpop.f32.mrb[55].mxu0 }
 0x26d   :  { %v3500_v62 = vadd.f32 %v3499_v45, %v3498_v23  ;;  %v2825_v22 = vadd.f32 %v3497_v11, %v2120_v19 }
 0x26f   :  { %v2828_v4 = vadd.f32 %v3500_v62, %v2120_v19  ;;  %v5052_v62 = vrot.slane %v3033_v60, %v4306_v34 }
 0x271   :  { %v3501_v40 = vpop.f32.mrb[56].mxu0 }
 0x272   :  { %v3502_v7 = vpop.f32.mrb[57].mxu0 }
 0x273   :  { %v3503_v9 = vadd.f32 %v3502_v7, %v3501_v40  ;;  %v3504_v15 = vpop.f32.mrb[58].mxu0  ;;  %v5055_v7 = vrot.slane %v3033_v60, %v4309_v35 }
 0x274   :  { %v3505_v5 = vpop.f32.mrb[59].mxu0 }
 0x275   :  { %v3506_v12 = vadd.f32 %v3505_v5, %v3504_v15  ;;  %v2833_v51 = vadd.f32 %v3503_v9, %v2120_v19  ;;  %v5059_v15 = vrot.slane %v3033_v60, %v4317_v37 }
 0x277   :  { %v2836_v3 = vadd.f32 %v3506_v12, %v2120_v19 }
 0x279   :  { %v3507_v10 = vpop.f32.mrb[60].mxu0 }
 0x27a   :  { %v3508_v30 = vpop.f32.mrb[61].mxu0 }
 0x27b   :  { %v3509_v16 = vadd.f32 %v3508_v30, %v3507_v10  ;;  %v3510_v59 = vpop.f32.mrb[62].mxu0 }
 0x27c   :  { %v3511_v44 = vpop.f32.mrb[63].mxu0 }
 0x27d   :  { %v3512_v18 = vadd.f32 %v3511_v44, %v3510_v59  ;;  %v2841_v52 = vadd.f32 %v3509_v16, %v2120_v19 }
 0x27f   :  { %v2844_v26 = vadd.f32 %v3512_v18, %v2120_v19 }
 0x282   :  { %v3529_v8 = vpop.f32.mrb[64].mxu0 }
 0x283   :  { %v3530_v20 = vpop.f32.mrb[65].mxu0 }
 0x284   :  { %v3531_v27 = vadd.f32 %v3530_v20, %v3529_v8  ;;  %v3532_v38 = vpop.f32.mrb[66].mxu0 }
 0x285   :  { %v3533_v24 = vpop.f32.mrb[67].mxu0 }
 0x286   :  { %v2882_v29 = vadd.f32 %v3531_v27, %v2817_v21  ;;  %v3534_v31 = vadd.f32 %v3533_v24, %v3532_v38 }
 0x288   :  { %v2885_v32 = vadd.f32 %v3534_v31, %v2820_v28  ;;  %v2914_v23 = vmax.f32 %v2882_v29, 0.0 }
 0x28a   :  { %v3535_v33 = vpop.f32.mrb[68].mxu0  ;;  %v2917_v12 = vmax.f32 %v2885_v32, 0.0  ;;  %v3052_v35 = vmul.f32 %v5055_v7, %v2914_v23 }
 0x28b   :  { %v3536_v46 = vpop.f32.mrb[69].mxu0 }
 0x28c   :  { %v3537_v14 = vadd.f32 %v3536_v46, %v3535_v33  ;;  %v3538_v47 = vpop.f32.mrb[70].mxu0  ;;  %v3055_v8 = vmul.f32 %v5055_v7, %v2917_v12  ;;  %v3075_v29 = vsel %vm2978_vm4, %v3052_v35, 0.0 }
 0x28d   :  { %v3539_v48 = vpop.f32.mrb[71].mxu0 }
 0x28e   :  { %v5029_v6 = vadd.f32 %v3537_v14, %v2825_v22  ;;  %v3540_v63 = vadd.f32 %v3539_v48, %v3538_v47 }
 0x290   :  { %v5031_v55 = vadd.f32 %v3540_v63, %v2828_v4  ;;  %v2920_v38 = vmax.f32 %v5029_v6, 0.0  ;;  %v3080_v4 = vsel %vm2978_vm4, %v3055_v8, 0.0 }
 0x292   :  { %v3541_v36 = vpop.f32.mrb[72].mxu0  ;;  %v2923_v22 = vmax.f32 %v5031_v55, 0.0 }
 0x293   :  { %v3542_v53 = vpop.f32.mrb[73].mxu0 }
 0x294   :  { %v3543_v54 = vadd.f32 %v3542_v53, %v3541_v36  ;;  %v3544_v56 = vpop.f32.mrb[74].mxu0 }
 0x295   :  { %v3545_v57 = vpop.f32.mrb[75].mxu0 }
 0x296   :  { %v5033_v2 = vadd.f32 %v3543_v54, %v2833_v51  ;;  %v3546_v49 = vadd.f32 %v3545_v57, %v3544_v56  ;;  %v3058_v54 = vmul.f32 %v5055_v7, %v2920_v38 }
 0x298   :  { %v5035_v58 = vadd.f32 %v3546_v49, %v2836_v3  ;;  %v3061_v3 = vmul.f32 %v5055_v7, %v2923_v22 }
 0x29a   :  { %v3547_v39 = vpop.f32.mrb[76].mxu0  ;;  %v2929_v23 = vmax.f32 %v5035_v58, 0.0 }
 0x29b   :  { %v3548_v61 = vpop.f32.mrb[77].mxu0 }
 0x29c   :  { %v3549_v0 = vadd.f32 %v3548_v61, %v3547_v39  ;;  %v3550_v41 = vpop.f32.mrb[78].mxu0 }
 0x29d   :  { %v3551_v1 = vpop.f32.mrb[79].mxu0 }
 0x29e   :  { %v5037_v13 = vadd.f32 %v3549_v0, %v2841_v52  ;;  %v3552_v50 = vadd.f32 %v3551_v1, %v3550_v41  ;;  %v2926_v52 = vmax.f32 %v5033_v2, 0.0  ;;  %v3085_v1 = vsel %vm2978_vm4, %v3058_v54, 0.0 }
 0x2a0   :  { %v5048_v25 = vadd.f32 %v3552_v50, %v2844_v26 }
 0x2a1   :  { %v2743_v11 = vpop.f32.mrb[64].mxu1 }
 0x2a2   :  { %v3569_v45 = vadd.f32 %v2743_v11, %v5040_v42  ;;  %v2745_v40 = vpop.f32.mrb[65].mxu1 }
 0x2a3   :  { %v3570_v9 = vadd.f32 %v2745_v40, %v5046_v43  ;;  %v2747_v5 = vpop.f32.mrb[66].mxu1 }
 0x2a4   :  { %v2912_v10 = vmax.f32 %v3569_v45, 0.0  ;;  %v3571_v30 = vadd.f32 %v2747_v5, %v5040_v42  ;;  %v2749_v16 = vpop.f32.mrb[67].mxu1  ;;  %v3090_v5 = vsel %vm2978_vm4, %v3061_v3, 0.0 }
 0x2a5   :  { %v2913_v59 = vmax.f32 %v3570_v9, 0.0  ;;  %v3572_v44 = vadd.f32 %v2749_v16, %v5046_v43 }
 0x2a6   :  { %v3050_v34 = vmul.f32 %v5052_v62, %v2912_v10  ;;  %v2915_v17 = vmax.f32 %v3571_v30, 0.0 }
 0x2a7   :  { %v3051_v18 = vmul.f32 %v5059_v15, %v2913_v59  ;;  %v2916_v19 = vmax.f32 %v3572_v44, 0.0  ;;  %v3064_v59 = vmul.f32 %v5055_v7, %v2926_v52 }
 0x2a8   :  { %v3053_v37 = vmul.f32 %v5052_v62, %v2915_v17  ;;  %v3067_v17 = vmul.f32 %v5055_v7, %v2929_v23 }
 0x2a9   :  { %v3054_v20 = vmul.f32 %v5059_v15, %v2916_v19  ;;  %v2753_v21 = vpop.f32.mrb[68].mxu1  ;;  %v3074_v27 = vadd.f32 %v3051_v18, %v3050_v34 }
 0x2aa   :  { %v3573_v24 = vadd.f32 %v2753_v21, %v5040_v42  ;;  %v2755_v28 = vpop.f32.mrb[69].mxu1  ;;  %v3095_v21 = vsel %vm2978_vm4, %v3064_v59, 0.0 }
 0x2ab   :  { %v3574_v31 = vadd.f32 %v2755_v28, %v5046_v43  ;;  %v2757_v32 = vpop.f32.mrb[70].mxu1  ;;  %v3076_v33 = vadd.f32 %v3075_v29, %v3074_v27  ;;  %v3079_v46 = vadd.f32 %v3054_v20, %v3053_v37  ;;  %v2932_v37 = vmax.f32 %v5037_v13, 0.0 }
 0x2ac   :  { %v2918_v14 = vmax.f32 %v3573_v24, 0.0  ;;  %v3575_v47 = vadd.f32 %v2757_v32, %v5040_v42  ;;  %v2759_v48 = vpop.f32.mrb[71].mxu1  ;;  %v2935_v29 = vmax.f32 %v5048_v25, 0.0 }
 0x2ad   :  { %v2919_v63 = vmax.f32 %v3574_v31, 0.0  ;;  %v3576_v6 = vadd.f32 %v2759_v48, %v5046_v43  ;;  %3077 = vadd.xlane.f32.xlu0 %v3076_v33  ;;  %v3081_v36 = vadd.f32 %v3080_v4, %v3079_v46  ;;  %v3100_v46 = vsel %vm2978_vm4, %v3067_v17, 0.0 }
 0x2ae   :  { %v3056_v53 = vmul.f32 %v5052_v62, %v2918_v14  ;;  %v2921_v51 = vmax.f32 %v3575_v47, 0.0  ;;  %v3070_v4 = vmul.f32 %v5055_v7, %v2932_v37 }
 0x2af   :  { %v3057_v56 = vmul.f32 %v5059_v15, %v2919_v63  ;;  %v2922_v57 = vmax.f32 %v3576_v6, 0.0  ;;  %3082 = vadd.xlane.f32.xlu1 %v3081_v36 }
 0x2b0   :  { %v3059_v55 = vmul.f32 %v5052_v62, %v2921_v51 }
 0x2b1   :  { %v3060_v49 = vmul.f32 %v5059_v15, %v2922_v57  ;;  %v2763_v39 = vpop.f32.mrb[72].mxu1  ;;  %v3084_v61 = vadd.f32 %v3057_v56, %v3056_v53 }
 0x2b2   :  { %v3577_v0 = vadd.f32 %v2763_v39, %v5040_v42  ;;  %v2765_v41 = vpop.f32.mrb[73].mxu1 }
 0x2b3   :  { %v3578_v26 = vadd.f32 %v2765_v41, %v5046_v43  ;;  %v2767_v50 = vpop.f32.mrb[74].mxu1  ;;  %v3086_v60 = vadd.f32 %v3085_v1, %v3084_v61  ;;  %v3089_v11 = vadd.f32 %v3060_v49, %v3059_v55  ;;  %v3392_v55 = vld [vmem:[%s5191_s11] ss:$0 sm:$0xff] }
 0x2b4   :  { %v2924_v45 = vmax.f32 %v3577_v0, 0.0  ;;  %v3579_v40 = vadd.f32 %v2767_v50, %v5040_v42  ;;  %v2769_v9 = vpop.f32.mrb[75].mxu1 }
 0x2b5   :  { %v2925_v12 = vmax.f32 %v3578_v26, 0.0  ;;  %v3580_v2 = vadd.f32 %v2769_v9, %v5046_v43  ;;  %3087 = vadd.xlane.f32.xlu0 %v3086_v60  ;;  %v3091_v10 = vadd.f32 %v3090_v5, %v3089_v11 }
 0x2b6   :  { %v3062_v30 = vmul.f32 %v5052_v62, %v2924_v45  ;;  %v2927_v16 = vmax.f32 %v3579_v40, 0.0 }
 0x2b7   :  { %v3063_v44 = vmul.f32 %v5059_v15, %v2925_v12  ;;  %v2928_v34 = vmax.f32 %v3580_v2, 0.0  ;;  %3092 = vadd.xlane.f32.xlu1 %v3091_v10 }
 0x2b8   :  { %v3065_v58 = vmul.f32 %v5052_v62, %v2927_v16 }
 0x2b9   :  { %v3066_v35 = vmul.f32 %v5059_v15, %v2928_v34  ;;  %v2773_v18 = vpop.f32.mrb[76].mxu1  ;;  %v3094_v19 = vadd.f32 %v3063_v44, %v3062_v30 }
 0x2ba   :  { %v3581_v8 = vadd.f32 %v2773_v18, %v5040_v42  ;;  %v2775_v20 = vpop.f32.mrb[77].mxu1 }
 0x2bb   :  { %v3582_v27 = vadd.f32 %v2775_v20, %v5046_v43  ;;  %v2777_v38 = vpop.f32.mrb[78].mxu1  ;;  %v3096_v24 = vadd.f32 %v3095_v21, %v3094_v19  ;;  %v3099_v28 = vadd.f32 %v3066_v35, %v3065_v58 }
 0x2bc   :  { %v2930_v31 = vmax.f32 %v3581_v8, 0.0  ;;  %v3583_v32 = vadd.f32 %v2777_v38, %v5040_v42  ;;  %v2779_v33 = vpop.f32.mrb[79].mxu1  ;;  %v3073_v42 = vmul.f32 %v5055_v7, %v2935_v29 }
 0x2bd   :  { %v2931_v22 = vmax.f32 %v3582_v27, 0.0  ;;  %v3584_v13 = vadd.f32 %v2779_v33, %v5046_v43  ;;  %3097 = vadd.xlane.f32.xlu0 %v3096_v24  ;;  %v3101_v14 = vadd.f32 %v3100_v46, %v3099_v28  ;;  %v3105_v43 = vsel %vm2978_vm4, %v3070_v4, 0.0 }
 0x2be   :  { %v3068_v47 = vmul.f32 %v5052_v62, %v2930_v31  ;;  %v2933_v48 = vmax.f32 %v3583_v32, 0.0  ;;  %v3110_v56 = vsel %vm2978_vm4, %v3073_v42, 0.0 }
 0x2bf   :  { %v3069_v63 = vmul.f32 %v5059_v15, %v2931_v22  ;;  %v2934_v6 = vmax.f32 %v3584_v13, 0.0  ;;  %3102 = vadd.xlane.f32.xlu1 %v3101_v14 }
 0x2c0   :  { %v3071_v25 = vmul.f32 %v5052_v62, %v2933_v48 }
 0x2c1   :  { %v3072_v36 = vmul.f32 %v5059_v15, %v2934_v6  ;;  %v3104_v53 = vadd.f32 %v3069_v63, %v3068_v47 }
 0x2c3   :  { %v3106_v51 = vadd.f32 %v3105_v43, %v3104_v53  ;;  %v3109_v54 = vadd.f32 %v3072_v36, %v3071_v25 }
 0x2c5   :  { %3107 = vadd.xlane.f32.xlu0 %v3106_v51  ;;  %v3111_v57 = vadd.f32 %v3110_v56, %v3109_v54 }
 0x2c7   :  { %3112 = vadd.xlane.f32.xlu1 %v3111_v57 }
 0x2d9   :  { %v2982_v62 = vpop.xlane.xlu0 %2981 }
 0x2da   :  { %v3025_v3 = vadd.f32 %v3392_v55, %v2982_v62 }
 0x2dc   :  { %3123 = vst.msk [vmem:[%s5192_s12] sm:$0xff] %vm3122_vm5, %v3025_v3 }
 0x2dd   :  { %v2987_v7 = vpop.xlane.xlu0 %2986 }
 0x2de   :  { %v3026_v15 = vadd.f32 %v3392_v55, %v2987_v7 }
 0x2e0   :  { %3124 = vst.msk [vmem:[%s5192_s12 + $0x8] sm:$0xff] %vm3122_vm5, %v3026_v15 }
 0x2e1   :  { %v2992_v49 = vpop.xlane.xlu1 %2991 }
 0x2e2   :  { %v3027_v39 = vadd.f32 %v3392_v55, %v2992_v49 }
 0x2e4   :  { %3125 = vst.msk [vmem:[%s5192_s12 + $0x10] sm:$0xff] %vm3122_vm5, %v3027_v39 }
 0x2e5   :  { %v2997_v61 = vpop.xlane.xlu1 %2996 }
 0x2e6   :  { %v3028_v52 = vadd.f32 %v3392_v55, %v2997_v61 }
 0x2e8   :  { %3126 = vst.msk [vmem:[%s5192_s12 + $0x18] sm:$0xff] %vm3122_vm5, %v3028_v52 }
 0x2e9   :  { %v3002_v0 = vpop.xlane.xlu0 %3001 }
 0x2ea   :  { %v3029_v41 = vadd.f32 %v3392_v55, %v3002_v0 }
 0x2eb   :  { %v3007_v1 = vpop.xlane.xlu1 %3006 }
 0x2ec   :  { %3127 = vst.msk [vmem:[%s5192_s12 + $0x20] sm:$0xff] %vm3122_vm5, %v3029_v41  ;;  %v3030_v26 = vadd.f32 %v3392_v55, %v3007_v1 }
 0x2ee   :  { %3128 = vst.msk [vmem:[%s5192_s12 + $0x28] sm:$0xff] %vm3122_vm5, %v3030_v26 }
 0x2f1   :  { %v3012_v50 = vpop.xlane.xlu0 %3011 }
 0x2f2   :  { %v3031_v60 = vadd.f32 %v3392_v55, %v3012_v50 }
 0x2f3   :  { %v3017_v11 = vpop.xlane.xlu1 %3016 }
 0x2f4   :  { %3129 = vst.msk [vmem:[%s5192_s12 + $0x30] sm:$0xff] %vm3122_vm5, %v3031_v60  ;;  %v3032_v23 = vadd.f32 %v3392_v55, %v3017_v11 }
 0x2f6   :  { %3130 = vst.msk [vmem:[%s5192_s12 + $0x38] sm:$0xff] %vm3122_vm5, %v3032_v23 }
 0x33a   :  { %v3078_v45 = vpop.xlane.xlu0 %3077 }
 0x33b   :  { %v3114_v40 = vadd.f32 %v3392_v55, %v3078_v45 }
 0x33c   :  { %v3083_v9 = vpop.xlane.xlu1 %3082 }
 0x33d   :  { %3132 = vst.msk [vmem:[%s5192_s12] sm:$0xff] %vm3131_vm6, %v3114_v40  ;;  %v3115_v5 = vadd.f32 %v3392_v55, %v3083_v9 }
 0x33f   :  { %3133 = vst.msk [vmem:[%s5192_s12 + $0x8] sm:$0xff] %vm3131_vm6, %v3115_v5 }
 0x342   :  { %v3088_v12 = vpop.xlane.xlu0 %3087 }
 0x343   :  { %v3116_v2 = vadd.f32 %v3392_v55, %v3088_v12 }
 0x344   :  { %v3093_v10 = vpop.xlane.xlu1 %3092 }
 0x345   :  { %3134 = vst.msk [vmem:[%s5192_s12 + $0x10] sm:$0xff] %vm3131_vm6, %v3116_v2  ;;  %v3117_v30 = vadd.f32 %v3392_v55, %v3093_v10 }
 0x347   :  { %3135 = vst.msk [vmem:[%s5192_s12 + $0x18] sm:$0xff] %vm3131_vm6, %v3117_v30 }
 0x34a   :  { %v3098_v16 = vpop.xlane.xlu0 %3097 }
 0x34b   :  { %v3118_v59 = vadd.f32 %v3392_v55, %v3098_v16 }
 0x34c   :  { %v3103_v44 = vpop.xlane.xlu1 %3102 }
 0x34d   :  { %3136 = vst.msk [vmem:[%s5192_s12 + $0x20] sm:$0xff] %vm3131_vm6, %v3118_v59  ;;  %v3119_v34 = vadd.f32 %v3392_v55, %v3103_v44 }
 0x34f   :  { %3137 = vst.msk [vmem:[%s5192_s12 + $0x28] sm:$0xff] %vm3131_vm6, %v3119_v34 }
 0x352   :  { %v3108_v58 = vpop.xlane.xlu0 %3107 }
 0x353   :  { %v3120_v17 = vadd.f32 %v3392_v55, %v3108_v58 }
 0x354   :  { %v3113_v35 = vpop.xlane.xlu1 %3112 }
 0x355   :  { %3138 = vst.msk [vmem:[%s5192_s12 + $0x30] sm:$0xff] %vm3131_vm6, %v3120_v17  ;;  %v3121_v18 = vadd.f32 %v3392_v55, %v3113_v35 }
 0x357   :  { %3139 = vst.msk [vmem:[%s5192_s12 + $0x38] sm:$0xff] %vm3131_vm6, %v3121_v18 }

</bundles_post_ra>
